<compile_context>
chip_gen: v5e
topology: v5e:2x2
jax: 0.10.0
libtpu: 0.0.40
codegen_flags: <defaults>
</compile_context>

<pallas_src>
import jax
import jax.numpy as jnp
from jax import lax
from jax.experimental import pallas as pl
from jax.experimental.pallas import tpu as pltpu


def bottleneck_kernel(x_ref, s1_ref, b1_ref, w1_ref, b2_ref, w2_ref, b3_ref,
                      w3_ref, out_ref, pad_ref):
    # x_ref : (NB, H, W, CIN)  f32        out_ref: (NB, H, W, COUT) f32, COUT == CIN
    # w1_ref: (CIN, C1)        bf16 (bn2 scale folded into output channels)
    # w2_ref: (9, C1, C2)      bf16 (per-tap slabs, bn3 scale folded)
    # w3_ref: (C2, COUT)       bf16
    # s1/b1/b2/b3: (1, C) f32 folded BatchNorm scale / bias
    # pad_ref: (NB, H+2, W+2, C1) bf16 VMEM scratch (zero-padded activations for conv2)
    NB, H, W, CIN = x_ref.shape
    C1 = w1_ref.shape[1]
    C2 = w2_ref.shape[2]
    COUT = w3_ref.shape[1]
    M = NB * H * W

    # bn1 + relu (f32, VPU). channel_selection has all-ones indexes -> identity.
    y = jnp.maximum(x_ref[...].reshape(M, CIN) * s1_ref[...] + b1_ref[...], 0.0)

    # conv1 (1x1) == channel matmul; bn2 scale folded into w1 -> only bias + relu here.
    z1 = jnp.dot(y.astype(jnp.bfloat16), w1_ref[...],
                 preferred_element_type=jnp.float32)
    a2 = jnp.maximum(z1 + b2_ref[...], 0.0).astype(jnp.bfloat16)

    # conv2 (3x3, stride 1, pad 1) as 9 shift-and-accumulate matmuls.
    # Build the zero-bordered scratch with dense (full-width) stores only:
    #   * top / bottom zero rows,
    #   * interior rows in ONE store, left/right zero columns folded in-register,
    # so there are no size-1-sublane masked stores.  The whole scratch is rewritten every
    # grid step, so this stays correct with the batch axis marked "parallel".
    zrow = jnp.zeros((NB, 1, W + 2, C1), jnp.bfloat16)
    zcol = jnp.zeros((NB, H, 1, C1), jnp.bfloat16)
    a2_rows = a2.reshape(NB, H, W, C1)
    pad_ref[:, 0:1, :, :] = zrow
    pad_ref[:, H + 1:H + 2, :, :] = zrow
    pad_ref[:, 1:H + 1, :, :] = jnp.concatenate([zcol, a2_rows, zcol], axis=2)

    z2 = None
    for ky in range(3):
        for kx in range(3):
            tap = pad_ref[:, ky:ky + H, kx:kx + W, :].reshape(M, C1)
            d = jnp.dot(tap, w2_ref[ky * 3 + kx], preferred_element_type=jnp.float32)
            z2 = d if z2 is None else z2 + d
    a3 = jnp.maximum(z2 + b3_ref[...], 0.0).astype(jnp.bfloat16)

    # conv3 (1x1)
    z3 = jnp.dot(a3, w3_ref[...], preferred_element_type=jnp.float32)  # (M, COUT)

    # residual add (downsample is None): re-read x_ref (cheap VMEM load, no long live range).
    out_ref[...] = z3.reshape(NB, H, W, COUT) + x_ref[...]


def _fold_bn(p, eps=1e-5):
    gamma, beta, mean, var = p
    scale = gamma / jnp.sqrt(var + eps)
    bias = beta - mean * scale
    return scale, bias


def _round_up(x, m):
    return (x + m - 1) // m * m


def _pick_nb(n, hw):
    # Largest per-step batch NB such that: NB divides N (no dropped remainder), the grid has
    # >= 2 steps whenever N >= 2 (megacore sharding + DMA pipelining), and per-step MXU rows
    # M = NB*H*W stay modest so blocks + scratch fit VMEM with double buffering.
    if n < 2:
        return 1
    best = 1
    for cand in range(1, n + 1):
        if n % cand == 0 and n // cand >= 2 and cand * hw <= 2048:
            best = cand
    return best


def _vmem_limit_bytes():
    # Per-generation VMEM budget: ~75% of physical (=> ~96 MiB on v5e/v6e, ~48 MiB on v7x),
    # conservative 32 MiB fallback if the hardware query is unavailable.
    try:
        return int(pltpu.get_tpu_info().vmem_capacity_bytes * 3 // 4)
    except Exception:
        return 32 * 1024 * 1024


def bottleneck_forward(x_nchw, bn1, bn2, bn3, w1_oihw, w2_oihw, w3_oihw):
    N, Cin, H, W = x_nchw.shape
    C1 = w1_oihw.shape[0]
    C2 = w2_oihw.shape[0]
    Cout = w3_oihw.shape[0]
    assert Cout == Cin, (
        "Only the downsample=None / stride=1 path is supported: the residual add requires "
        "planes*4 == inplanes (got Cout=%d, Cin=%d)." % (Cout, Cin))

    s1, b1 = _fold_bn(bn1)
    s2, b2 = _fold_bn(bn2)
    s3, b3 = _fold_bn(bn3)

    # Lane-dense channel padding (multiples of 128).
    CPI = _round_up(Cin, 128)
    CP1 = _round_up(C1, 128)
    CP2 = _round_up(C2, 128)
    CPO = _round_up(Cout, 128)

    def pad_last(v, cp):
        return jnp.pad(v, [(0, 0)] * (v.ndim - 1) + [(0, cp - v.shape[-1])])

    x = jnp.transpose(x_nchw, (0, 2, 3, 1)).astype(jnp.float32)        # NHWC
    x = pad_last(x, CPI)

    s1p = pad_last(s1, CPI).reshape(1, CPI)
    b1p = pad_last(b1, CPI).reshape(1, CPI)

    # conv1 weight with bn2 scale folded into output channels.
    w1 = jnp.transpose(w1_oihw[:, :, 0, 0], (1, 0)) * s2[None, :]      # (Cin, C1)
    w1 = jnp.pad(w1, ((0, CPI - Cin), (0, CP1 - C1))).astype(jnp.bfloat16)
    b2p = pad_last(b2, CP1).reshape(1, CP1)

    # conv2 weight with bn3 scale folded; per-tap layout (9, CP1, CP2), tap = ky*3 + kx.
    w2 = jnp.transpose(w2_oihw, (2, 3, 1, 0)) * s3[None, None, None, :]  # (3,3,C1,C2)
    w2 = jnp.pad(w2, ((0, 0), (0, 0), (0, CP1 - C1), (0, CP2 - C2)))
    w2 = w2.reshape(9, CP1, CP2).astype(jnp.bfloat16)
    b3p = pad_last(b3, CP2).reshape(1, CP2)

    w3 = jnp.transpose(w3_oihw[:, :, 0, 0], (1, 0))                     # (C2, Cout)
    w3 = jnp.pad(w3, ((0, CP2 - C2), (0, CPO - Cout))).astype(jnp.bfloat16)

    NB = _pick_nb(N, H * W)
    grid = (N // NB,)

    # Constant operands: resident once in VMEM (no per-step double buffering).
    const_spec = pl.BlockSpec(memory_space=pltpu.MemorySpace.VMEM)

    out_nhwc = pl.pallas_call(
        bottleneck_kernel,
        out_shape=jax.ShapeDtypeStruct((N, H, W, CPO), jnp.float32),
        grid_spec=pltpu.PrefetchScalarGridSpec(
            num_scalar_prefetch=0,
            grid=grid,
            in_specs=[
                pl.BlockSpec((NB, H, W, CPI), lambda n: (n, 0, 0, 0)),
                const_spec,   # s1
                const_spec,   # b1
                const_spec,   # w1
                const_spec,   # b2
                const_spec,   # w2
                const_spec,   # b3
                const_spec,   # w3
            ],
            out_specs=pl.BlockSpec((NB, H, W, CPO), lambda n: (n, 0, 0, 0)),
            scratch_shapes=[pltpu.VMEM((NB, H + 2, W + 2, CP1), jnp.bfloat16)],
        ),
        compiler_params=pltpu.CompilerParams(
            dimension_semantics=("parallel",),
            vmem_limit_bytes=_vmem_limit_bytes(),
        ),
    )(x, s1p, b1p, w1, b2p, w2, b3p, w3)

    out_nhwc = out_nhwc[..., :Cout]                                    # drop channel padding
    return jnp.transpose(out_nhwc, (0, 3, 1, 2))                       # back to NCHW


def reference_nchw(x, bn1, bn2, bn3, w1, w2, w3, eps=1e-5):
    def bn(t, p):
        g, b, m, v = (a.reshape(1, -1, 1, 1) for a in p)
        return (t - m) / jnp.sqrt(v + eps) * g + b
    dn = ('NCHW', 'OIHW', 'NCHW')
    out = jax.nn.relu(bn(x, bn1))
    out = lax.conv_general_dilated(out, w1, (1, 1), 'VALID', dimension_numbers=dn)
    out = jax.nn.relu(bn(out, bn2))
    out = lax.conv_general_dilated(out, w2, (1, 1), ((1, 1), (1, 1)), dimension_numbers=dn)
    out = jax.nn.relu(bn(out, bn3))
    out = lax.conv_general_dilated(out, w3, (1, 1), 'VALID', dimension_numbers=dn)
    return out + x


if __name__ == "__main__":
    key = jax.random.PRNGKey(0)
    N, H, W = 2, 8, 8
    inplanes, planes = 16, 4
    cfg = (16, 8, 8)            # cfg[0] == inplanes (channel_selection keeps everything)
    Cout = planes * 4           # == inplanes so the residual add is well-defined

    ks = jax.random.split(key, 8)

    def bn_params(k, c):
        k1, k2, k3, k4 = jax.random.split(k, 4)
        gamma = 1.0 + 0.1 * jax.random.normal(k1, (c,), jnp.float32)
        beta = 0.1 * jax.random.normal(k2, (c,), jnp.float32)
        mean = 0.1 * jax.random.normal(k3, (c,), jnp.float32)
        var = jax.random.uniform(k4, (c,), jnp.float32, minval=0.5, maxval=1.5)
        return gamma, beta, mean, var

    bn1 = bn_params(ks[0], inplanes)
    bn2 = bn_params(ks[1], cfg[1])
    bn3 = bn_params(ks[2], cfg[2])
    w1 = 0.1 * jax.random.normal(ks[3], (cfg[1], cfg[0], 1, 1), jnp.float32)   # OIHW
    w2 = 0.1 * jax.random.normal(ks[4], (cfg[2], cfg[1], 3, 3), jnp.float32)   # OIHW
    w3 = 0.1 * jax.random.normal(ks[5], (Cout, cfg[2], 1, 1), jnp.float32)     # OIHW
    x = jax.random.normal(ks[6], (N, inplanes, H, W), jnp.float32)             # NCHW (PyTorch)

    out = bottleneck_forward(x, bn1, bn2, bn3, w1, w2, w3)
    out = jax.block_until_ready(out)

    ref = reference_nchw(x, bn1, bn2, bn3, w1, w2, w3)
    assert out.shape == (N, Cout, H, W)
    err = float(jnp.max(jnp.abs(out - ref)))
    # bf16 matmul operands (f32 accumulation) -> loosened tolerance vs the pure-f32 reference.
    assert jnp.allclose(out, ref, rtol=5e-2, atol=5e-2), f"max abs err {err}"
    print("KERNEL_OK")
</pallas_src>

<mosaic_0001>
module attributes {stable_mosaic.version = 11 : i64} {
  func.func @bottleneck_kernel(%arg0: i32, %arg1: memref<1x8x8x128xf32, #tpu.memory_space<vmem>>, %arg2: memref<1x128xf32, #tpu.memory_space<vmem>>, %arg3: memref<1x128xf32, #tpu.memory_space<vmem>>, %arg4: memref<128x128xbf16, #tpu.memory_space<vmem>>, %arg5: memref<1x128xf32, #tpu.memory_space<vmem>>, %arg6: memref<9x128x128xbf16, #tpu.memory_space<vmem>>, %arg7: memref<1x128xf32, #tpu.memory_space<vmem>>, %arg8: memref<128x128xbf16, #tpu.memory_space<vmem>>, %arg9: memref<1x8x8x128xf32, #tpu.memory_space<vmem>>, %arg10: memref<1x10x10x128xbf16, #tpu.memory_space<vmem>>) attributes {dimension_semantics = [#tpu.dimension_semantics<parallel>], iteration_bounds = array<i64: 2>, scalar_prefetch = 0 : i64, scratch_operands = 1 : i64, tpu.core_type = #tpu.core_type<tc>, window_params = [{transform_indices = @transform_0, window_bounds = array<i64: 1, 8, 8, 128>}, {pipeline_mode = #tpu.pipeline_mode<synchronous>, transform_indices = @transform_1, window_bounds = array<i64: 1, 128>}, {pipeline_mode = #tpu.pipeline_mode<synchronous>, transform_indices = @transform_2, window_bounds = array<i64: 1, 128>}, {pipeline_mode = #tpu.pipeline_mode<synchronous>, transform_indices = @transform_3, window_bounds = array<i64: 128, 128>}, {pipeline_mode = #tpu.pipeline_mode<synchronous>, transform_indices = @transform_4, window_bounds = array<i64: 1, 128>}, {pipeline_mode = #tpu.pipeline_mode<synchronous>, transform_indices = @transform_5, window_bounds = array<i64: 9, 128, 128>}, {pipeline_mode = #tpu.pipeline_mode<synchronous>, transform_indices = @transform_6, window_bounds = array<i64: 1, 128>}, {pipeline_mode = #tpu.pipeline_mode<synchronous>, transform_indices = @transform_7, window_bounds = array<i64: 128, 128>}, {transform_indices = @transform_8, window_bounds = array<i64: 1, 8, 8, 128>}]} {
    %c0 = arith.constant 0 : index
    %c0_0 = arith.constant 0 : index
    %c0_1 = arith.constant 0 : index
    %c0_2 = arith.constant 0 : index
    %0 = vector.load %arg1[%c0, %c0_0, %c0_1, %c0_2] : memref<1x8x8x128xf32, #tpu.memory_space<vmem>>, vector<1x8x8x128xf32>
    %1 = vector.shape_cast %0 : vector<1x8x8x128xf32> to vector<64x128xf32>
    %c0_3 = arith.constant 0 : index
    %c0_4 = arith.constant 0 : index
    %2 = vector.load %arg2[%c0_3, %c0_4] : memref<1x128xf32, #tpu.memory_space<vmem>>, vector<1x128xf32>
    %3 = vector.broadcast %2 : vector<1x128xf32> to vector<64x128xf32>
    %4 = arith.mulf %1, %3 : vector<64x128xf32>
    %c0_5 = arith.constant 0 : index
    %c0_6 = arith.constant 0 : index
    %5 = vector.load %arg3[%c0_5, %c0_6] : memref<1x128xf32, #tpu.memory_space<vmem>>, vector<1x128xf32>
    %6 = vector.broadcast %5 : vector<1x128xf32> to vector<64x128xf32>
    %7 = arith.addf %4, %6 : vector<64x128xf32>
    %cst = arith.constant 0.000000e+00 : f32
    %8 = vector.broadcast %cst : f32 to vector<64x128xf32>
    %9 = arith.maximumf %7, %8 : vector<64x128xf32>
    %10 = arith.truncf %9 : vector<64x128xf32> to vector<64x128xbf16>
    %c0_7 = arith.constant 0 : index
    %c0_8 = arith.constant 0 : index
    %11 = vector.load %arg4[%c0_7, %c0_8] : memref<128x128xbf16, #tpu.memory_space<vmem>>, vector<128x128xbf16>
    %cst_9 = arith.constant dense<0.000000e+00> : vector<64x128xf32>
    %12 = tpu.matmul %10, %11, %cst_9 {dimension_numbers = #tpu.dot_dimension_numbers<[1], [0], [0], [1], [0, 0, 1, 1], [], []>} : vector<64x128xbf16>, vector<128x128xbf16>, vector<64x128xf32> -> vector<64x128xf32>
    %c0_10 = arith.constant 0 : index
    %c0_11 = arith.constant 0 : index
    %13 = vector.load %arg5[%c0_10, %c0_11] : memref<1x128xf32, #tpu.memory_space<vmem>>, vector<1x128xf32>
    %14 = vector.broadcast %13 : vector<1x128xf32> to vector<64x128xf32>
    %15 = arith.addf %12, %14 : vector<64x128xf32>
    %cst_12 = arith.constant 0.000000e+00 : f32
    %16 = vector.broadcast %cst_12 : f32 to vector<64x128xf32>
    %17 = arith.maximumf %15, %16 : vector<64x128xf32>
    %18 = arith.truncf %17 : vector<64x128xf32> to vector<64x128xbf16>
    %cst_13 = arith.constant 0.000000e+00 : bf16
    %19 = vector.broadcast %cst_13 : bf16 to vector<1x1x10x128xbf16>
    %cst_14 = arith.constant 0.000000e+00 : bf16
    %20 = vector.broadcast %cst_14 : bf16 to vector<1x8x1x128xbf16>
    %21 = vector.shape_cast %18 : vector<64x128xbf16> to vector<1x8x8x128xbf16>
    %c0_15 = arith.constant 0 : index
    %c0_16 = arith.constant 0 : index
    %c0_17 = arith.constant 0 : index
    %c0_18 = arith.constant 0 : index
    %22 = vector.load %arg10[%c0_15, %c0_16, %c0_17, %c0_18] : memref<1x10x10x128xbf16, #tpu.memory_space<vmem>>, vector<1x1x10x128xbf16>
    tpu.vector_store %arg10[%c0_15, %c0_16, %c0_17, %c0_18], %19 {strides = array<i32>} : memref<1x10x10x128xbf16, #tpu.memory_space<vmem>>, vector<1x1x10x128xbf16>,
    %c0_19 = arith.constant 0 : index
    %c9 = arith.constant 9 : index
    %c0_20 = arith.constant 0 : index
    %c0_21 = arith.constant 0 : index
    %23 = vector.load %arg10[%c0_19, %c9, %c0_20, %c0_21] : memref<1x10x10x128xbf16, #tpu.memory_space<vmem>>, vector<1x1x10x128xbf16>
    tpu.vector_store %arg10[%c0_19, %c9, %c0_20, %c0_21], %19 {strides = array<i32>} : memref<1x10x10x128xbf16, #tpu.memory_space<vmem>>, vector<1x1x10x128xbf16>,
    %24 = tpu.concatenate %20, %21, %20 in 2 : vector<1x8x1x128xbf16>, vector<1x8x8x128xbf16>, vector<1x8x1x128xbf16> -> vector<1x8x10x128xbf16>
    %c0_22 = arith.constant 0 : index
    %c1 = arith.constant 1 : index
    %c0_23 = arith.constant 0 : index
    %c0_24 = arith.constant 0 : index
    %25 = vector.load %arg10[%c0_22, %c1, %c0_23, %c0_24] : memref<1x10x10x128xbf16, #tpu.memory_space<vmem>>, vector<1x8x10x128xbf16>
    tpu.vector_store %arg10[%c0_22, %c1, %c0_23, %c0_24], %24 {strides = array<i32>} : memref<1x10x10x128xbf16, #tpu.memory_space<vmem>>, vector<1x8x10x128xbf16>,
    %c0_25 = arith.constant 0 : index
    %c0_26 = arith.constant 0 : index
    %c0_27 = arith.constant 0 : index
    %c0_28 = arith.constant 0 : index
    %26 = vector.load %arg10[%c0_25, %c0_26, %c0_27, %c0_28] : memref<1x10x10x128xbf16, #tpu.memory_space<vmem>>, vector<1x8x8x128xbf16>
    %27 = vector.shape_cast %26 : vector<1x8x8x128xbf16> to vector<64x128xbf16>
    %c0_29 = arith.constant 0 : index
    %c0_30 = arith.constant 0 : index
    %c0_31 = arith.constant 0 : index
    %28 = vector.load %arg6[%c0_29, %c0_30, %c0_31] : memref<9x128x128xbf16, #tpu.memory_space<vmem>>, vector<1x128x128xbf16>
    %29 = vector.shape_cast %28 : vector<1x128x128xbf16> to vector<128x128xbf16>
    %cst_32 = arith.constant dense<0.000000e+00> : vector<64x128xf32>
    %30 = tpu.matmul %27, %29, %cst_32 {dimension_numbers = #tpu.dot_dimension_numbers<[1], [0], [0], [1], [0, 0, 1, 1], [], []>} : vector<64x128xbf16>, vector<128x128xbf16>, vector<64x128xf32> -> vector<64x128xf32>
    %c0_33 = arith.constant 0 : index
    %c0_34 = arith.constant 0 : index
    %c1_35 = arith.constant 1 : index
    %c0_36 = arith.constant 0 : index
    %31 = vector.load %arg10[%c0_33, %c0_34, %c1_35, %c0_36] : memref<1x10x10x128xbf16, #tpu.memory_space<vmem>>, vector<1x8x8x128xbf16>
    %32 = vector.shape_cast %31 : vector<1x8x8x128xbf16> to vector<64x128xbf16>
    %c1_37 = arith.constant 1 : index
    %c0_38 = arith.constant 0 : index
    %c0_39 = arith.constant 0 : index
    %33 = vector.load %arg6[%c1_37, %c0_38, %c0_39] : memref<9x128x128xbf16, #tpu.memory_space<vmem>>, vector<1x128x128xbf16>
    %34 = vector.shape_cast %33 : vector<1x128x128xbf16> to vector<128x128xbf16>
    %cst_40 = arith.constant dense<0.000000e+00> : vector<64x128xf32>
    %35 = tpu.matmul %32, %34, %cst_40 {dimension_numbers = #tpu.dot_dimension_numbers<[1], [0], [0], [1], [0, 0, 1, 1], [], []>} : vector<64x128xbf16>, vector<128x128xbf16>, vector<64x128xf32> -> vector<64x128xf32>
    %36 = arith.addf %30, %35 : vector<64x128xf32>
    %c0_41 = arith.constant 0 : index
    %c0_42 = arith.constant 0 : index
    %c2 = arith.constant 2 : index
    %c0_43 = arith.constant 0 : index
    %37 = vector.load %arg10[%c0_41, %c0_42, %c2, %c0_43] : memref<1x10x10x128xbf16, #tpu.memory_space<vmem>>, vector<1x8x8x128xbf16>
    %38 = vector.shape_cast %37 : vector<1x8x8x128xbf16> to vector<64x128xbf16>
    %c2_44 = arith.constant 2 : index
    %c0_45 = arith.constant 0 : index
    %c0_46 = arith.constant 0 : index
    %39 = vector.load %arg6[%c2_44, %c0_45, %c0_46] : memref<9x128x128xbf16, #tpu.memory_space<vmem>>, vector<1x128x128xbf16>
    %40 = vector.shape_cast %39 : vector<1x128x128xbf16> to vector<128x128xbf16>
    %cst_47 = arith.constant dense<0.000000e+00> : vector<64x128xf32>
    %41 = tpu.matmul %38, %40, %cst_47 {dimension_numbers = #tpu.dot_dimension_numbers<[1], [0], [0], [1], [0, 0, 1, 1], [], []>} : vector<64x128xbf16>, vector<128x128xbf16>, vector<64x128xf32> -> vector<64x128xf32>
    %42 = arith.addf %36, %41 : vector<64x128xf32>
    %c0_48 = arith.constant 0 : index
    %c1_49 = arith.constant 1 : index
    %c0_50 = arith.constant 0 : index
    %c0_51 = arith.constant 0 : index
    %43 = vector.load %arg10[%c0_48, %c1_49, %c0_50, %c0_51] : memref<1x10x10x128xbf16, #tpu.memory_space<vmem>>, vector<1x8x8x128xbf16>
    %44 = vector.shape_cast %43 : vector<1x8x8x128xbf16> to vector<64x128xbf16>
    %c3 = arith.constant 3 : index
    %c0_52 = arith.constant 0 : index
    %c0_53 = arith.constant 0 : index
    %45 = vector.load %arg6[%c3, %c0_52, %c0_53] : memref<9x128x128xbf16, #tpu.memory_space<vmem>>, vector<1x128x128xbf16>
    %46 = vector.shape_cast %45 : vector<1x128x128xbf16> to vector<128x128xbf16>
    %cst_54 = arith.constant dense<0.000000e+00> : vector<64x128xf32>
    %47 = tpu.matmul %44, %46, %cst_54 {dimension_numbers = #tpu.dot_dimension_numbers<[1], [0], [0], [1], [0, 0, 1, 1], [], []>} : vector<64x128xbf16>, vector<128x128xbf16>, vector<64x128xf32> -> vector<64x128xf32>
    %48 = arith.addf %42, %47 : vector<64x128xf32>
    %c0_55 = arith.constant 0 : index
    %c1_56 = arith.constant 1 : index
    %c1_57 = arith.constant 1 : index
    %c0_58 = arith.constant 0 : index
    %49 = vector.load %arg10[%c0_55, %c1_56, %c1_57, %c0_58] : memref<1x10x10x128xbf16, #tpu.memory_space<vmem>>, vector<1x8x8x128xbf16>
    %50 = vector.shape_cast %49 : vector<1x8x8x128xbf16> to vector<64x128xbf16>
    %c4 = arith.constant 4 : index
    %c0_59 = arith.constant 0 : index
    %c0_60 = arith.constant 0 : index
    %51 = vector.load %arg6[%c4, %c0_59, %c0_60] : memref<9x128x128xbf16, #tpu.memory_space<vmem>>, vector<1x128x128xbf16>
    %52 = vector.shape_cast %51 : vector<1x128x128xbf16> to vector<128x128xbf16>
    %cst_61 = arith.constant dense<0.000000e+00> : vector<64x128xf32>
    %53 = tpu.matmul %50, %52, %cst_61 {dimension_numbers = #tpu.dot_dimension_numbers<[1], [0], [0], [1], [0, 0, 1, 1], [], []>} : vector<64x128xbf16>, vector<128x128xbf16>, vector<64x128xf32> -> vector<64x128xf32>
    %54 = arith.addf %48, %53 : vector<64x128xf32>
    %c0_62 = arith.constant 0 : index
    %c1_63 = arith.constant 1 : index
    %c2_64 = arith.constant 2 : index
    %c0_65 = arith.constant 0 : index
    %55 = vector.load %arg10[%c0_62, %c1_63, %c2_64, %c0_65] : memref<1x10x10x128xbf16, #tpu.memory_space<vmem>>, vector<1x8x8x128xbf16>
    %56 = vector.shape_cast %55 : vector<1x8x8x128xbf16> to vector<64x128xbf16>
    %c5 = arith.constant 5 : index
    %c0_66 = arith.constant 0 : index
    %c0_67 = arith.constant 0 : index
    %57 = vector.load %arg6[%c5, %c0_66, %c0_67] : memref<9x128x128xbf16, #tpu.memory_space<vmem>>, vector<1x128x128xbf16>
    %58 = vector.shape_cast %57 : vector<1x128x128xbf16> to vector<128x128xbf16>
    %cst_68 = arith.constant dense<0.000000e+00> : vector<64x128xf32>
    %59 = tpu.matmul %56, %58, %cst_68 {dimension_numbers = #tpu.dot_dimension_numbers<[1], [0], [0], [1], [0, 0, 1, 1], [], []>} : vector<64x128xbf16>, vector<128x128xbf16>, vector<64x128xf32> -> vector<64x128xf32>
    %60 = arith.addf %54, %59 : vector<64x128xf32>
    %c0_69 = arith.constant 0 : index
    %c2_70 = arith.constant 2 : index
    %c0_71 = arith.constant 0 : index
    %c0_72 = arith.constant 0 : index
    %61 = vector.load %arg10[%c0_69, %c2_70, %c0_71, %c0_72] : memref<1x10x10x128xbf16, #tpu.memory_space<vmem>>, vector<1x8x8x128xbf16>
    %62 = vector.shape_cast %61 : vector<1x8x8x128xbf16> to vector<64x128xbf16>
    %c6 = arith.constant 6 : index
    %c0_73 = arith.constant 0 : index
    %c0_74 = arith.constant 0 : index
    %63 = vector.load %arg6[%c6, %c0_73, %c0_74] : memref<9x128x128xbf16, #tpu.memory_space<vmem>>, vector<1x128x128xbf16>
    %64 = vector.shape_cast %63 : vector<1x128x128xbf16> to vector<128x128xbf16>
    %cst_75 = arith.constant dense<0.000000e+00> : vector<64x128xf32>
    %65 = tpu.matmul %62, %64, %cst_75 {dimension_numbers = #tpu.dot_dimension_numbers<[1], [0], [0], [1], [0, 0, 1, 1], [], []>} : vector<64x128xbf16>, vector<128x128xbf16>, vector<64x128xf32> -> vector<64x128xf32>
    %66 = arith.addf %60, %65 : vector<64x128xf32>
    %c0_76 = arith.constant 0 : index
    %c2_77 = arith.constant 2 : index
    %c1_78 = arith.constant 1 : index
    %c0_79 = arith.constant 0 : index
    %67 = vector.load %arg10[%c0_76, %c2_77, %c1_78, %c0_79] : memref<1x10x10x128xbf16, #tpu.memory_space<vmem>>, vector<1x8x8x128xbf16>
    %68 = vector.shape_cast %67 : vector<1x8x8x128xbf16> to vector<64x128xbf16>
    %c7 = arith.constant 7 : index
    %c0_80 = arith.constant 0 : index
    %c0_81 = arith.constant 0 : index
    %69 = vector.load %arg6[%c7, %c0_80, %c0_81] : memref<9x128x128xbf16, #tpu.memory_space<vmem>>, vector<1x128x128xbf16>
    %70 = vector.shape_cast %69 : vector<1x128x128xbf16> to vector<128x128xbf16>
    %cst_82 = arith.constant dense<0.000000e+00> : vector<64x128xf32>
    %71 = tpu.matmul %68, %70, %cst_82 {dimension_numbers = #tpu.dot_dimension_numbers<[1], [0], [0], [1], [0, 0, 1, 1], [], []>} : vector<64x128xbf16>, vector<128x128xbf16>, vector<64x128xf32> -> vector<64x128xf32>
    %72 = arith.addf %66, %71 : vector<64x128xf32>
    %c0_83 = arith.constant 0 : index
    %c2_84 = arith.constant 2 : index
    %c2_85 = arith.constant 2 : index
    %c0_86 = arith.constant 0 : index
    %73 = vector.load %arg10[%c0_83, %c2_84, %c2_85, %c0_86] : memref<1x10x10x128xbf16, #tpu.memory_space<vmem>>, vector<1x8x8x128xbf16>
    %74 = vector.shape_cast %73 : vector<1x8x8x128xbf16> to vector<64x128xbf16>
    %c8 = arith.constant 8 : index
    %c0_87 = arith.constant 0 : index
    %c0_88 = arith.constant 0 : index
    %75 = vector.load %arg6[%c8, %c0_87, %c0_88] : memref<9x128x128xbf16, #tpu.memory_space<vmem>>, vector<1x128x128xbf16>
    %76 = vector.shape_cast %75 : vector<1x128x128xbf16> to vector<128x128xbf16>
    %cst_89 = arith.constant dense<0.000000e+00> : vector<64x128xf32>
    %77 = tpu.matmul %74, %76, %cst_89 {dimension_numbers = #tpu.dot_dimension_numbers<[1], [0], [0], [1], [0, 0, 1, 1], [], []>} : vector<64x128xbf16>, vector<128x128xbf16>, vector<64x128xf32> -> vector<64x128xf32>
    %78 = arith.addf %72, %77 : vector<64x128xf32>
    %c0_90 = arith.constant 0 : index
    %c0_91 = arith.constant 0 : index
    %79 = vector.load %arg7[%c0_90, %c0_91] : memref<1x128xf32, #tpu.memory_space<vmem>>, vector<1x128xf32>
    %80 = vector.broadcast %79 : vector<1x128xf32> to vector<64x128xf32>
    %81 = arith.addf %78, %80 : vector<64x128xf32>
    %cst_92 = arith.constant 0.000000e+00 : f32
    %82 = vector.broadcast %cst_92 : f32 to vector<64x128xf32>
    %83 = arith.maximumf %81, %82 : vector<64x128xf32>
    %84 = arith.truncf %83 : vector<64x128xf32> to vector<64x128xbf16>
    %c0_93 = arith.constant 0 : index
    %c0_94 = arith.constant 0 : index
    %85 = vector.load %arg8[%c0_93, %c0_94] : memref<128x128xbf16, #tpu.memory_space<vmem>>, vector<128x128xbf16>
    %cst_95 = arith.constant dense<0.000000e+00> : vector<64x128xf32>
    %86 = tpu.matmul %84, %85, %cst_95 {dimension_numbers = #tpu.dot_dimension_numbers<[1], [0], [0], [1], [0, 0, 1, 1], [], []>} : vector<64x128xbf16>, vector<128x128xbf16>, vector<64x128xf32> -> vector<64x128xf32>
    %87 = vector.shape_cast %86 : vector<64x128xf32> to vector<1x8x8x128xf32>
    %c0_96 = arith.constant 0 : index
    %c0_97 = arith.constant 0 : index
    %c0_98 = arith.constant 0 : index
    %c0_99 = arith.constant 0 : index
    %88 = vector.load %arg1[%c0_96, %c0_97, %c0_98, %c0_99] : memref<1x8x8x128xf32, #tpu.memory_space<vmem>>, vector<1x8x8x128xf32>
    %89 = arith.addf %87, %88 : vector<1x8x8x128xf32>
    %c0_100 = arith.constant 0 : index
    %c0_101 = arith.constant 0 : index
    %c0_102 = arith.constant 0 : index
    %c0_103 = arith.constant 0 : index
    %90 = vector.load %arg9[%c0_100, %c0_101, %c0_102, %c0_103] : memref<1x8x8x128xf32, #tpu.memory_space<vmem>>, vector<1x8x8x128xf32>
    tpu.vector_store %arg9[%c0_100, %c0_101, %c0_102, %c0_103], %89 {strides = array<i32>} : memref<1x8x8x128xf32, #tpu.memory_space<vmem>>, vector<1x8x8x128xf32>,
    return
  }
  func.func @transform_0(%arg0: i32) -> (i32, i32, i32, i32) {
    %c0_i32 = arith.constant 0 : i32
    %c0_i32_0 = arith.constant 0 : i32
    %c0_i32_1 = arith.constant 0 : i32
    %c0_i32_2 = arith.constant 0 : i32
    return %arg0, %c0_i32, %c0_i32_0, %c0_i32_1 : i32, i32, i32, i32
  }
  func.func @transform_1(%arg0: i32) -> (i32, i32) {
    %c0_i32 = arith.constant 0 : i32
    %c0_i32_0 = arith.constant 0 : i32
    %c0_i32_1 = arith.constant 0 : i32
    return %c0_i32, %c0_i32_0 : i32, i32
  }
  func.func @transform_2(%arg0: i32) -> (i32, i32) {
    %c0_i32 = arith.constant 0 : i32
    %c0_i32_0 = arith.constant 0 : i32
    %c0_i32_1 = arith.constant 0 : i32
    return %c0_i32, %c0_i32_0 : i32, i32
  }
  func.func @transform_3(%arg0: i32) -> (i32, i32) {
    %c0_i32 = arith.constant 0 : i32
    %c0_i32_0 = arith.constant 0 : i32
    %c0_i32_1 = arith.constant 0 : i32
    return %c0_i32, %c0_i32_0 : i32, i32
  }
  func.func @transform_4(%arg0: i32) -> (i32, i32) {
    %c0_i32 = arith.constant 0 : i32
    %c0_i32_0 = arith.constant 0 : i32
    %c0_i32_1 = arith.constant 0 : i32
    return %c0_i32, %c0_i32_0 : i32, i32
  }
  func.func @transform_5(%arg0: i32) -> (i32, i32, i32) {
    %c0_i32 = arith.constant 0 : i32
    %c0_i32_0 = arith.constant 0 : i32
    %c0_i32_1 = arith.constant 0 : i32
    %c0_i32_2 = arith.constant 0 : i32
    return %c0_i32, %c0_i32_0, %c0_i32_1 : i32, i32, i32
  }
  func.func @transform_6(%arg0: i32) -> (i32, i32) {
    %c0_i32 = arith.constant 0 : i32
    %c0_i32_0 = arith.constant 0 : i32
    %c0_i32_1 = arith.constant 0 : i32
    return %c0_i32, %c0_i32_0 : i32, i32
  }
  func.func @transform_7(%arg0: i32) -> (i32, i32) {
    %c0_i32 = arith.constant 0 : i32
    %c0_i32_0 = arith.constant 0 : i32
    %c0_i32_1 = arith.constant 0 : i32
    return %c0_i32, %c0_i32_0 : i32, i32
  }
  func.func @transform_8(%arg0: i32) -> (i32, i32, i32, i32) {
    %c0_i32 = arith.constant 0 : i32
    %c0_i32_0 = arith.constant 0 : i32
    %c0_i32_1 = arith.constant 0 : i32
    %c0_i32_2 = arith.constant 0 : i32
    return %arg0, %c0_i32, %c0_i32_0, %c0_i32_1 : i32, i32, i32, i32
  }
}

</mosaic_0001>

<bundles_post_ra>
// kernel: tpu_custom_call.1
= control target key start
LH: loop header
LB: loop body
LE: loop exit
PB: predicated region body
PF: predicated region fallthrough
CT: control target
= control target key end

     0   :  { %s4096_s0 = inlined_call_operand.hbm [shape: f32[2,8,8,128], index: 0, kind: input, shape index: {}]   ;;  %s4097_s1 = inlined_call_operand.hbm [shape: f32[1,128], index: 1, kind: input, shape index: {}]   ;;  %s4098_s2 = inlined_call_operand.vmem [shape: f32[1,128], index: 2, kind: input, shape index: {}]   ;;  %s4099_s3 = inlined_call_operand.hbm [shape: bf16[128,128], index: 3, kind: input, shape index: {}]   ;;  %s4100_s4 = inlined_call_operand.vmem [shape: f32[1,128], index: 4, kind: input, shape index: {}]   ;;  %s4101_s5 = inlined_call_operand.hbm [shape: bf16[9,128,128], index: 5, kind: input, shape index: {}]   ;;  %s4102_s6 = inlined_call_operand.vmem [shape: f32[1,128], index: 6, kind: input, shape index: {}]   ;;  %s4103_s7 = inlined_call_operand.hbm [shape: bf16[128,128], index: 7, kind: input, shape index: {}]   ;;  %s4104_s8 = inlined_call_operand.hbm [shape: f32[2,8,8,128], index: 8, kind: output, shape index: {}]  }
   0x1   :  { %4105 = sst [smem:[#allocation17_spill]] %s4097_s1 }
   0x2   :  { %4106 = sst [smem:[#allocation18_spill]] %s4099_s3 }
   0x3   :  { %13 = vsyncpa [#allocation4], 0 }
   0x4   :  { %15 = vsyncpa [#allocation4 + $0x1], 0 }
   0x5   :  { %16 = vsyncpa [#allocation7], 0 }
   0x6   :  { %17 = vsyncpa [#allocation10], 0 }
   0x7   :  { %18 = vsyncpa [#allocation5], 0 }
   0x8   :  { %20 = vsyncpa [#allocation5 + $0x1], 0  ;;  %s3600_s27 = smov 0   ;;  %s3602_s28 = smov 0  }
   0x9   :  { %s3604_s29 = smov 0   ;;  %s3606_s30 = smov 0  }
   0xa LB: > { %s3621_s9 = sadd.s32 4294967295, %s3542_s30   ;;  %s2648_s10 = sadd.s32 4294967294, %s3542_s30   ;;  %s3542_s30 = sphi %s3606_s30, %s4127_s30   ;;  %s3538_s29 = sphi %s3604_s29, %s4126_s29   ;;  %s3534_s28 = sphi %s3602_s28, %s4125_s28   ;;  %s3530_s27 = sphi %s3600_s27, %s4124_s27  }
   0xb   : > { %p46_p0 = scmp.ne.s32.totalorder %s3534_s28, %s3530_s27  ;;  %p47_p1 = scmp.eq.s32.totalorder %s3621_s9, 0 }
   0xc   : > { %p217_p2 = scmp.eq.s32.totalorder %s3621_s9, 1  ;;  %p223_p3 = scmp.eq.s32.totalorder %s2648_s10, 1 }
   0xd   : > { %p3630_p4 = por %p47_p1, %p46_p0  ;;  %p2649_p5 = scmp.ge.s32.totalorder %s3542_s30, 1 }
   0xe   : > { %p3635_p6 = por %p223_p3, %p46_p0  ;;  %p230_p7 = scmp.lt.s32.totalorder %s3542_s30, 3 }
   0xf   : > { %s4109_s1 = sld [smem:[#allocation17_spill]]  ;;  %s3544_s17 = smov [#allocation6]  }
  0x10   : > { %p3643_p8 = pnand %p2649_p5, %p230_p7  ;;  %s244_s18 = sshll.u32 %s3544_s17, 4  ;;  %s245_s18 = int_to_ptr.vmem [resolvable:$true] %s244_s18 }
  0x11   : > { %s273_s22 = sshll.u32 %s4101_s5, 4  ;;  %s3545_s23 = smov [#allocation9]   ;;  %s274_s22 = int_to_ptr.hbm [resolvable:$true] %s273_s22 }
  0x12   : > { %p3240_p10 = pneg %p3643_p8  ;;  %s275_s24 = sshll.u32 %s3545_s23, 4  ;;  %s276_s24 = int_to_ptr.vmem [resolvable:$true] %s275_s24 }
  0x13   : > { %s4112_s3 = sld [smem:[#allocation18_spill]]  ;;  %s3546_s13 = smov 64  }
  0x14   : > { %p3652_p11 = pnand %p3240_p10, %p47_p1  ;;  %s3547_s14 = smov 4  }
  0x15   : > { %s242_s15 = sshll.u32 %s4109_s1, 4  ;;  %s3548_s20 = smov [#allocation8]   ;;  %s243_s15 = int_to_ptr.hbm [resolvable:$true] %s242_s15 }
  0x16   : > { %3243 = dma.hbm_to_vmem [thread:$0]  (!%p3652_p11), %s243_s15, 16, %s245_s18, [#allocation7]  }
  0x17   : > { %3249 = dma.hbm_to_vmem [thread:$0]  (!%p3652_p11), %s274_s22, 9216, %s276_s24, [#allocation10], %s3546_s13, %s3546_s13, %s3547_s14  }
  0x18   : > { %s290_s18 = sshll.u32 %s4103_s7, 4  ;;  %s258_s21 = sshll.u32 %s3548_s20, 4  ;;  %s291_s18 = int_to_ptr.hbm [resolvable:$true] %s290_s18  ;;  %s259_s21 = int_to_ptr.vmem [resolvable:$true] %s258_s21 }
  0x19   : > { %s256_s10 = sshll.u32 %s4112_s3, 4  ;;  %s3549_s23 = smov [#allocation11]   ;;  %s257_s10 = int_to_ptr.hbm [resolvable:$true] %s256_s10 }
  0x1a   : > { %3246 = dma.hbm_to_vmem [thread:$0]  (!%p3652_p11), %s257_s10, 1024, %s259_s21, [#allocation7], %s3546_s13, %s3546_s13, %s3547_s14  }
  0x1b   : > { %s292_s25 = sshll.u32 %s3549_s23, 4  ;;  %s3674_s22 = sadd.s32 1, %s3542_s30   ;;  %s293_s25 = int_to_ptr.vmem [resolvable:$true] %s292_s25 }
  0x1c   : > { %3252 = dma.hbm_to_vmem [thread:$0]  (!%p3652_p11), %s291_s18, 1024, %s293_s25, [#allocation10], %s3546_s13, %s3546_s13, %s3547_s14  }
  0x1d   : > { %s33_s24 = sadd.s32 1, %s3538_s29  ;;  %s30_s26 = ssub.s32 %s3542_s30, %s3674_s22 }
  0x1e   : > { %p40_p12 = scmp.ne.s32.totalorder %s3538_s29, %s3534_s28  ;;  %p31_p13 = scmp.eq.s32.totalorder %s30_s26, 0 }
  0x1f   : > { %p41_p0 = scmp.eq.s32.totalorder %s3542_s30, 0  ;;  %p3265_p5 = scmp.lt.s32.totalorder %s3542_s30, 2 }
  0x20   : > { %p3684_p3 = por %p217_p2, %p40_p12  ;;  %s306_s15 = sand.u32 1, %s3538_s29  }
  0x21   : > { %s3690_s10 = scalar_select %p31_p13, %s3538_s29, %s33_s24  }
  0x22   : > { %p42_p7 = por %p41_p0, %p40_p12  ;;  %s2655_s19 = sshll.u32 %s306_s15, 6 }
  0x23   : > { %s3094_s13 = sshll.u32 %s3542_s30, 6  ;;  %s310_s21 = scalar_lea.vmem [#allocation3], %s2655_s19 }
  0x24   : > { %s315_s20 = scalar_lea.hbm %s4096_s0, %s3094_s13  ;;  %s318_s23 = sshll.u32 %s310_s21, 4  ;;  %s319_s23 = int_to_ptr.vmem [resolvable:$true] %s318_s23 }
  0x25   : > { %s316_s25 = sshll.u32 %s315_s20, 4  ;;  %p3697_p2 = pnand %p3265_p5, %p42_p7  ;;  %s317_s25 = int_to_ptr.hbm [resolvable:$true] %s316_s25 }
  0x26   : > { %s307_s24 = scalar_lea.sflag [#allocation4], %s306_s15  ;;  %s3438_s1 = sshra.s32 %s317_s25, 4  ;;  %s3439_s1 = int_to_ptr.hbm [resolvable:$true] %s3438_s1 }
  0x27   : > { %s3440_s3 = scalar_lea.hbm %s3439_s1, 64  ;;  %p3442_p11 = pneg %p3697_p2 }
  0x28   : > { %p3441_p10 = scmp.ne.s32.totalorder %s3439_s1, %s3440_s3  ;;  %s3445_s14 = scalar_lea.hbm %s4096_s0, 128 }
  0x29   : > { %p3446_p0 = scmp.lt.s32.totalorder %s3439_s1, %s4096_s0  ;;  %p3447_p5 = scmp.lt.s32.totalorder %s3445_s14, %s3440_s3 }
  0x2a   : > { %p3443_p12 = pnand %p3442_p11, %p3441_p10 }
  0x2b   : > { %p3448_p7 = por %p3447_p5, %p3446_p0 }
  0x2c   : > { %p3444_p13 = pneg %p3443_p12 }
  0x2e   : > { %p3449_p9 = pnand %p3448_p7, %p3444_p13 }
  0x30   : > { %3452 = shalt.err (!%p3449_p9)
}
  0x31   : > { %s3550_s15 = smov 128   ;;  %s3551_s21 = smov 8  }
  0x32   : > { %3256 = dma.hbm_to_vmem [thread:$0]  (!%p3697_p2), %s317_s25, 1024, %s319_s23, %s307_s24, %s3550_s15, %s3550_s15, %s3551_s21  }
  0x33   : > { %330 = sbr.rel (%p3643_p8) target bundleno = 719 (0x2cf), region = 52  ;;  %s3714_s13 = sand.u32 (!%p3643_p8), 1, %s3534_s28  }
  0x34   : > { %s2659_s1 = sshll.u32 (!%p3643_p8), %s3714_s13, 6  ;;  %s333_s3 = scalar_lea.sflag (!%p3643_p8), [#allocation4], %s3714_s13 }
  0x35   : > { %s3720_s19 = scalar_lea.vmem (!%p3643_p8), [#allocation3], %s2659_s1 }
  0x38   : > { %3513 = dma.done.wait (%p3630_p4), %s333_s3, 1024  }
  0x39   : > { %3515 = vsyncadd (%p3630_p4), %s333_s3, 4294966272 }
  0x3a   : > { %3517 = dma.done.wait (%p47_p1), [#allocation7], 1040  }
  0x3b   : > { %3519 = vsyncadd (%p47_p1), [#allocation7], 4294966256 }
  0x3c   : > { %3521 = dma.done.wait (%p47_p1), [#allocation10], 10240  }
  0x3d   : > { %3523 = vsyncadd (%p47_p1), [#allocation10], 4294957056  ;;  %v3102_v0 = vld [vmem:[#allocation8 + $0x38] sm:$0xff]  ;;  %v3101_v1 = vld [vmem:[#allocation8 + $0x30] sm:$0xff]  ;;  %vm641_vm0 = vcmask 1040384   ;;  %vm652_vm3 = vcmask 1044480  }
  0x3e   : > { %503 = vmatpush.bf16.msra.mxu0 %v3102_v0  ;;  %3196 = vmatpush.bf16.msra.mxu3 %v3102_v0  ;;  %v3100_v2 = vld [vmem:[#allocation8 + $0x28] sm:$0xff]  ;;  %v3099_v3 = vld [vmem:[#allocation8 + $0x20] sm:$0xff]  ;;  %v3098_v4 = vld [vmem:[#allocation8 + $0x18] sm:$0xff]  ;;  %vm642_vm1 = vsmask.f32 256  ;;  %vm1118_vm4 = vcmask 1042432  }
  0x3f   : > { %v391_v5 = vld [vmem:[%s3720_s19] sm:$0xff]  ;;  %v392_v7 = vld [vmem:[%s3720_s19 + $0x8] sm:$0xff]  ;;  %v3315_v12 = vld [vmem:[%s4098_s2] ss:$0 sm:$0xff]  ;;  %vm653_vm2 = vsmask.f32 4352 }
  0x40   : > { %v3314_v6 = vld [vmem:[#allocation6] ss:$0 sm:$0xff]  ;;  %v396_v9 = vld [vmem:[%s3720_s19 + $0x28] sm:$0xff]  ;;  %v3097_v15 = vld [vmem:[#allocation8 + $0x10] sm:$0xff]  ;;  %vm1119_vm5 = vcmask 1046532   ;;  %s4045_s14 = scalar_lea.vmem [#allocation12], %s2659_s1 }
  0x41   : > { %v395_v8 = vld [vmem:[%s3720_s19 + $0x20] sm:$0xff]  ;;  %v403_v10 = vmul.f32 %v3314_v6, %v391_v5  ;;  %v404_v11 = vmul.f32 %v3314_v6, %v392_v7  ;;  %v408_v14 = vmul.f32 %v3314_v6, %v396_v9  ;;  %v3096_v20 = vld [vmem:[#allocation8 + $0x8] sm:$0xff]  ;;  %v394_v29 = vld [vmem:[%s3720_s19 + $0x18] sm:$0xff]  ;;  %vm768_vm9 = vsmask.f32 3328  ;;  %s3195_s18 = sshll.u32 %s3621_s9, 6 }
  0x42   : > { %504 = vmatpush.bf16.msra.mxu0 %v3101_v1  ;;  %3197 = vmatpush.bf16.msra.mxu3 %v3101_v1  ;;  %v407_v13 = vmul.f32 %v3314_v6, %v395_v8  ;;  %v3095_v25 = vld [vmem:[#allocation8] sm:$0xff]  ;;  %v393_v28 = vld [vmem:[%s3720_s19 + $0x10] sm:$0xff]  ;;  %v398_v31 = vld [vmem:[%s3720_s19 + $0x38] sm:$0xff]  ;;  %v406_v33 = vmul.f32 %v3314_v6, %v394_v29  ;;  %v3552_v1 = vmov 0   ;;  %vm769_vm10 = vsmask.f32 7440  ;;  %s2533_s21 = scalar_lea.hbm %s4104_s8, %s3195_s18 }
  0x43   : > { %v415_v16 = vadd.f32 %v3315_v12, %v403_v10  ;;  %v416_v17 = vadd.f32 %v3315_v12, %v404_v11  ;;  %v420_v19 = vadd.f32 %v3315_v12, %v408_v14  ;;  %v397_v30 = vld [vmem:[%s3720_s19 + $0x30] sm:$0xff]  ;;  %v405_v32 = vmul.f32 %v3314_v6, %v393_v28  ;;  %v3114_v46 = vld [vmem:[#allocation9 + $0x38] sm:$0xff]  ;;  %v3111_v53 = vld [vmem:[#allocation9 + $0x20] sm:$0xff]  ;;  %548 = vst [vmem:[#allocation2] sm:$0xf] %v3552_v1  ;;  %s2534_s1 = sshll.u32 %s4045_s14, 4  ;;  %s2535_s1 = int_to_ptr.vmem [resolvable:$true] %s2534_s1 }
  0x44   : > { %v419_v18 = vadd.f32 %v3315_v12, %v407_v13  ;;  %v409_v34 = vmul.f32 %v3314_v6, %v397_v30  ;;  %v410_v35 = vmul.f32 %v3314_v6, %v398_v31  ;;  %v418_v37 = vadd.f32 %v3315_v12, %v406_v33  ;;  %1065 = vmatpush.bf16.msra.mxu2 %v3114_v46  ;;  %v3113_v47 = vld [vmem:[#allocation9 + $0x30] sm:$0xff]  ;;  %v3130_v48 = vld [vmem:[#allocation9 + $0xb8] sm:$0xff]  ;;  %v3112_v49 = vld [vmem:[#allocation9 + $0x28] sm:$0xff]  ;;  %s2536_s3 = sshll.u32 %s2533_s21, 4  ;;  %s2522_s11 = scalar_lea.sflag [#allocation5], %s3714_s13  ;;  %s2537_s3 = int_to_ptr.hbm [resolvable:$true] %s2536_s3 }
  0x45   : > { %v423_v21 = vmax.f32 %v415_v16, 0.0  ;;  %v424_v22 = vmax.f32 %v416_v17, 0.0  ;;  %v428_v24 = vmax.f32 %v420_v19, 0.0  ;;  %v417_v36 = vadd.f32 %v3315_v12, %v405_v32  ;;  %v3142_v50 = vld [vmem:[#allocation9 + $0xf8] sm:$0xff]  ;;  %v3129_v51 = vld [vmem:[#allocation9 + $0xb0] sm:$0xff]  ;;  %v3128_v55 = vld [vmem:[#allocation9 + $0xa8] sm:$0xff] }
  0x46   : > { %505 = vmatpush.bf16.msra.mxu0 %v3100_v2  ;;  %3198 = vmatpush.bf16.msra.mxu3 %v3100_v2  ;;  %v427_v23 = vmax.f32 %v419_v18, 0.0  ;;  %v421_v38 = vadd.f32 %v3315_v12, %v409_v34  ;;  %v422_v39 = vadd.f32 %v3315_v12, %v410_v35  ;;  %v426_v41 = vmax.f32 %v418_v37, 0.0  ;;  %v3122_v52 = vld [vmem:[#allocation9 + $0x78] sm:$0xff]  ;;  %v3141_v54 = vld [vmem:[#allocation9 + $0xf0] sm:$0xff]  ;;  %v3140_v58 = vld [vmem:[#allocation9 + $0xe8] sm:$0xff]  ;;  %s3482_s16 = sshra.s32 %s2537_s3, 4  ;;  %s3483_s16 = int_to_ptr.hbm [resolvable:$true] %s3482_s16 }
  0x47   : > { %v431_v26 = vpack.c.bf16 %v424_v22, %v423_v21  ;;  %v425_v40 = vmax.f32 %v417_v36, 0.0  ;;  %964 = vmatpush.bf16.msra.mxu1 %v3122_v52  ;;  %v3121_v56 = vld [vmem:[#allocation9 + $0x70] sm:$0xff]  ;;  %v3110_v57 = vld [vmem:[#allocation9 + $0x18] sm:$0xff]  ;;  %v3127_v59 = vld [vmem:[#allocation9 + $0xa0] sm:$0xff]  ;;  %549 = vst [vmem:[#allocation2 + $0x4] sm:$0x1] %v3552_v1  ;;  %p3489_p9 = scmp.lt.s32.totalorder %s3483_s16, %s4104_s8 }
  0x48   : > { %v433_v27 = vpack.c.bf16 %v428_v24, %v427_v23  ;;  %v429_v42 = vmax.f32 %v421_v38, 0.0  ;;  %v430_v43 = vmax.f32 %v422_v39, 0.0  ;;  %1066 = vmatpush.bf16.msra.mxu2 %v3113_v47  ;;  %v3120_v60 = vld [vmem:[#allocation9 + $0x68] sm:$0xff]  ;;  %v3109_v61 = vld [vmem:[#allocation9 + $0x10] sm:$0xff]  ;;  %v3139_v62 = vld [vmem:[#allocation9 + $0xe0] sm:$0xff]  ;;  %s3484_s9 = scalar_lea.hbm %s3483_s16, 64 }
  0x49   : > { %v432_v44 = vpack.c.bf16 %v426_v41, %v425_v40  ;;  %v3126_v63 = vld [vmem:[#allocation9 + $0x98] sm:$0xff]  ;;  %v3119_v0 = vld [vmem:[#allocation9 + $0x60] sm:$0xff]  ;;  %v3108_v2 = vld [vmem:[#allocation9 + $0x8] sm:$0xff]  ;;  %551 = vst [vmem:[#allocation2 + $0x48] sm:$0xf] %v3552_v1  ;;  %p3485_p1 = scmp.ne.s32.totalorder %s3483_s16, %s3484_s9  ;;  %s3488_s26 = scalar_lea.hbm %s4104_s8, 128 }
  0x4a   : > { %506 = vmatpush.bf16.msra.mxu0 %v3099_v3  ;;  %3199 = vmatpush.bf16.msra.mxu3 %v3099_v3  ;;  %v434_v45 = vpack.c.bf16 %v430_v43, %v429_v42  ;;  %v3138_v3 = vld [vmem:[#allocation9 + $0xd8] sm:$0xff]  ;;  %v3748_v5 = vld [vmem:[%s4100_s4] ss:$0 sm:$0xff]  ;;  %552 = vst [vmem:[#allocation2 + $0x4c] sm:$0x1] %v3552_v1  ;;  %v3107_v7 = vld [vmem:[#allocation9] sm:$0xff]  ;;  %p3490_p2 = scmp.lt.s32.totalorder %s3488_s26, %s3484_s9 }
  0x4b   : > { %965 = vmatpush.bf16.msra.mxu1 %v3121_v56  ;;  %v3118_v6 = vld [vmem:[#allocation9 + $0x58] sm:$0xff]  ;;  %v3137_v8 = vld [vmem:[#allocation9 + $0xd0] sm:$0xff]  ;;  %v3124_v10 = vld [vmem:[#allocation9 + $0x88] sm:$0xff]  ;;  %p3486_p4 = pnand %p3485_p1, %p3684_p3 }
  0x4c   : > { %1067 = vmatpush.bf16.msra.mxu2 %v3112_v49  ;;  %v3117_v12 = vld [vmem:[#allocation9 + $0x50] sm:$0xff]  ;;  %v3136_v14 = vld [vmem:[#allocation9 + $0xc8] sm:$0xff]  ;;  %v3135_v22 = vld [vmem:[#allocation9 + $0xc0] sm:$0xff]  ;;  %p3491_p10 = por %p3490_p2, %p3489_p9 }
  0x4d   : > { %v3116_v18 = vld [vmem:[#allocation9 + $0x48] sm:$0xff]  ;;  %v3115_v32 = vld [vmem:[#allocation9 + $0x40] sm:$0xff]  ;;  %vm3757_vm6 = vmand %vm641_vm0, %vm642_vm1  ;;  %p3487_p8 = pneg %p3486_p4 }
  0x4e   : > { %507 = vmatpush.bf16.msra.mxu0 %v3098_v4  ;;  %3200 = vmatpush.bf16.msra.mxu3 %v3098_v4  ;;  %v3125_v4 = vld [vmem:[#allocation9 + $0x90] sm:$0xff]  ;;  %vm3764_vm7 = vmand %vm652_vm3, %vm653_vm2 }
  0x4f   : > { %966 = vmatpush.bf16.msra.mxu1 %v3120_v60  ;;  %v3753_v31 = vld [vmem:[#allocation2 + $0x4] sm:$0x1]  ;;  %vm3771_vm8 = vmor %vm1118_vm4, %vm1119_vm5  ;;  %p3492_p11 = pnand %p3491_p10, %p3487_p8 }
  0x50   : > { %1068 = vmatpush.bf16.msra.mxu2 %v3111_v53  ;;  %v1123_v42 = vrot.slane %v3753_v31, 5  ;;  %vm3802_vm11 = vmor %vm768_vm9, %vm769_vm10 }
  0x52   : > { %508 = vmatpush.bf16.msra.mxu0 %v3097_v15  ;;  %3201 = vmatpush.bf16.msra.mxu3 %v3097_v15  ;;  %v3123_v15 = vld [vmem:[#allocation9 + $0x80] sm:$0xff] }
  0x53   : > { %967 = vmatpush.bf16.msra.mxu1 %v3119_v0 }
  0x54   : > { %1069 = vmatpush.bf16.msra.mxu2 %v3110_v57 }
  0x56   : > { %509 = vmatpush.bf16.msra.mxu0 %v3096_v20  ;;  %3202 = vmatpush.bf16.msra.mxu3 %v3096_v20 }
  0x57   : > { %968 = vmatpush.bf16.msra.mxu1 %v3118_v6 }
  0x58   : > { %1070 = vmatpush.bf16.msra.mxu2 %v3109_v61 }
  0x5a   : > { %510 = vmatpush.bf16.msra.mxu0 %v3095_v25  ;;  %3203 = vmatpush.bf16.msra.mxu3 %v3095_v25 }
  0x5b   : > { %969 = vmatpush.bf16.msra.mxu1 %v3117_v12  ;;  %v781_v12 = vshll.u32 %v3753_v31, 16 }
  0x5c   : > { %1071 = vmatpush.bf16.msra.mxu2 %v3108_v2 }
  0x5d   : > { %511 = vmatmul.bf16.vlgmr.msra.gmra.mxu0 %v431_v26  ;;  %521 = vmatmul.bf16.vlgmr.msra.gmra.mxu3 %v433_v27  ;;  %v736_v26 = vld [vmem:[#allocation2] sm:$0xf] }
  0x5e   : > { %1234 = vmatpush.bf16.msrb.mxu3 %v3130_v48  ;;  %1368 = vmatpush.bf16.msrb.mxu0 %v3142_v50  ;;  %v1094_v27 = vld [vmem:[#allocation2] sm:$0xe]  ;;  %v772_v33 = vshrl.u32 %v736_v26, 16  ;;  %v775_v34 = vshll.u32 %v736_v26, 16 }
  0x5f   : > { %970 = vmatpush.bf16.msra.mxu1 %v3116_v18  ;;  %v2777_v41 = vrot.slane %v1094_v27, 9 }
  0x60   : > { %1072 = vmatpush.bf16.msra.mxu2 %v3107_v7  ;;  %v774_v50 = vrot.slane %v772_v33, 4 }
  0x62   : > { %1235 = vmatpush.bf16.msrb.mxu3 %v3129_v51  ;;  %1369 = vmatpush.bf16.msrb.mxu0 %v3141_v54  ;;  %v777_v51 = vrot.slane %v775_v34, 5 }
  0x63   : > { %971 = vmatpush.bf16.msra.mxu1 %v3115_v32 }
  0x64   : > { %v778_v2 = vor.u32 %v777_v51, %v774_v50 }
  0x66   : > { %1236 = vmatpush.bf16.msrb.mxu3 %v3128_v55  ;;  %1370 = vmatpush.bf16.msrb.mxu0 %v3140_v58 }
  0x6a   : > { %1237 = vmatpush.bf16.msrb.mxu3 %v3127_v59  ;;  %1371 = vmatpush.bf16.msrb.mxu0 %v3139_v62  ;;  %v3782_v62 = vsel %vm3771_vm8, %v2777_v41, %v1123_v42  ;;  %v3177_v41 = vld [vmem:[#allocation9 + $0x1f0] sm:$0xff] }
  0x6d   : > { %516 = vmatmul.bf16.gmra.mxu0 %v432_v44  ;;  %526 = vmatmul.bf16.gmra.mxu3 %v434_v45 }
  0x6e   : > { %1238 = vmatpush.bf16.msrb.mxu3 %v3126_v63  ;;  %1372 = vmatpush.bf16.msrb.mxu0 %v3138_v3 }
  0x72   : > { %1239 = vmatpush.bf16.msrb.mxu3 %v3125_v4  ;;  %1373 = vmatpush.bf16.msrb.mxu0 %v3137_v8 }
  0x76   : > { %1240 = vmatpush.bf16.msrb.mxu3 %v3124_v10  ;;  %1374 = vmatpush.bf16.msrb.mxu0 %v3136_v14 }
  0x7a   : > { %1241 = vmatpush.bf16.msrb.mxu3 %v3123_v15  ;;  %1375 = vmatpush.bf16.msrb.mxu0 %v3135_v22 }
  0xda   : > { %v512_v9 = vpop.f32.mrf.mxu0 }
  0xdb   : > { %v513_v11 = vadd.f32 %v3748_v5, %v512_v9 }
  0xdd   : > { %v532_v13 = vmax.f32 %v513_v11, 0.0 }
  0xdf   : > { %v540_v16 = vpack.c.bf16 %v532_v13, %v532_v13 }
  0xe0   : > { %v522_v17 = vpop.f32.mrf.mxu3 }
  0xe1   : > { %v561_v19 = vunpack.c.l.b16 %v540_v16  ;;  %v523_v20 = vadd.f32 %v3748_v5, %v522_v17 }
  0xe2   : > { %v514_v21 = vpop.f32.mrf.mxu0 }
  0xe3   : > { %v569_v23 = vpack.c.b16 %v561_v19, %v561_v19  ;;  %v515_v24 = vadd.f32 %v3748_v5, %v514_v21  ;;  %v536_v25 = vmax.f32 %v523_v20, 0.0  ;;  %v3788_v19 = vrot.slane %v778_v2, 4 }
  0xe5   : > { %v578_v28 = vshrl.u32 %v569_v23, 16  ;;  %v533_v29 = vmax.f32 %v515_v24, 0.0  ;;  %v544_v30 = vpack.c.bf16 %v536_v25, %v536_v25  ;;  %v581_v36 = vshll.u32 %v569_v23, 16 }
  0xe7   : > { %v580_v35 = vrot.slane %v578_v28, 7  ;;  %v541_v37 = vpack.c.bf16 %v533_v29, %v533_v29  ;;  %v565_v38 = vunpack.c.l.b16 %v544_v30  ;;  %v3150_v28 = vld [vmem:[#allocation9 + $0x138] sm:$0xff] }
  0xe8   : > { %v524_v40 = vpop.f32.mrf.mxu3  ;;  %v3178_v29 = vld [vmem:[#allocation9 + $0x1f8] sm:$0xff]  ;;  %1614 = vmatpush.bf16.msrb.mxu1 %v3150_v28 }
  0xe9   : > { %v583_v43 = vor.u32 %v581_v36, %v580_v35  ;;  %v562_v45 = vunpack.c.l.b16 %v541_v37  ;;  %v573_v46 = vpack.c.b16 %v565_v38, %v565_v38  ;;  %v525_v47 = vadd.f32 %v3748_v5, %v524_v40  ;;  %v2731_v37 = vld [vmem:[#allocation2] sm:$0xf]  ;;  %2169 = vmatpush.bf16.msra.mxu0 %v3178_v29 }
  0xea   : > { %v517_v48 = vpop.f32.mrf.mxu0  ;;  %v3797_v38 = vrot.slane %v781_v12, 5  ;;  %v3149_v40 = vld [vmem:[#allocation9 + $0x130] sm:$0xff] }
  0xeb   : > { %v644_v52 = vsel %vm3757_vm6, 0, %v583_v43  ;;  %v570_v53 = vpack.c.b16 %v562_v45, %v562_v45  ;;  %v606_v54 = vshrl.u32 %v573_v46, 16  ;;  %v609_v56 = vshll.u32 %v573_v46, 16 }
  0xec   : > { %v655_v55 = vsel %vm3764_vm7, %v644_v52, 0  ;;  %v518_v57 = vadd.f32 %v3748_v5, %v517_v48  ;;  %v537_v58 = vmax.f32 %v525_v47, 0.0  ;;  %v1170_v52 = vunpack.c.l.b16 %v3782_v62  ;;  %1615 = vmatpush.bf16.msrb.mxu1 %v3149_v40 }
  0xed   : > { %v671_v59 = vunpack.c.l.b16 %v655_v55  ;;  %v672_v60 = vunpack.c.h.b16 %v655_v55  ;;  %v585_v61 = vshrl.u32 %v570_v53, 16  ;;  %v608_v63 = vrot.slane %v606_v54, 7  ;;  %2170 = vmatpush.bf16.msra.mxu0 %v3177_v41 }
  0xee   : > { %v534_v0 = vmax.f32 %v518_v57, 0.0  ;;  %v545_v1 = vpack.c.bf16 %v537_v58, %v537_v58  ;;  %v588_v7 = vshll.u32 %v570_v53, 16 }
  0xef   : > { %v687_v3 = vpack.c.b16 %v671_v59, %v671_v59  ;;  %v688_v4 = vpack.c.b16 %v672_v60, %v672_v60  ;;  %v587_v6 = vrot.slane %v585_v61, 7  ;;  %v611_v8 = vor.u32 %v609_v56, %v608_v63 }
  0xf0   : > { %v542_v9 = vpack.c.bf16 %v534_v0, %v534_v0  ;;  %v566_v10 = vunpack.c.l.b16 %v545_v1  ;;  %v527_v11 = vpop.f32.mrf.mxu3 }
  0xf1   : > { %720 = vst [vmem:[#allocation2 + $0x8] sm:$0xf] %v687_v3  ;;  %v590_v13 = vor.u32 %v588_v7, %v587_v6  ;;  %v528_v14 = vadd.f32 %v3748_v5, %v527_v11  ;;  %v648_v15 = vsel %vm3757_vm6, 0, %v611_v8 }
  0xf2   : > { %721 = vst [vmem:[#allocation2 + $0xc] sm:$0x1] %v688_v4  ;;  %v563_v16 = vunpack.c.l.b16 %v542_v9  ;;  %v574_v17 = vpack.c.b16 %v566_v10, %v566_v10  ;;  %v519_v18 = vpop.f32.mrf.mxu0  ;;  %v659_v21 = vsel %vm3764_vm7, %v648_v15, 0 }
  0xf3   : > { %v645_v20 = vsel %vm3757_vm6, 0, %v590_v13  ;;  %v520_v22 = vadd.f32 %v3748_v5, %v519_v18  ;;  %v538_v23 = vmax.f32 %v528_v14, 0.0  ;;  %v679_v25 = vunpack.c.l.b16 %v659_v21 }
  0xf4   : > { %v656_v24 = vsel %vm3764_vm7, %v645_v20, 0  ;;  %v680_v26 = vunpack.c.h.b16 %v659_v21  ;;  %v571_v27 = vpack.c.b16 %v563_v16, %v563_v16  ;;  %v613_v32 = vshrl.u32 %v574_v17, 16 }
  0xf5   : > { %v673_v30 = vunpack.c.l.b16 %v656_v24  ;;  %v674_v31 = vunpack.c.h.b16 %v656_v24  ;;  %v616_v33 = vshll.u32 %v574_v17, 16  ;;  %v695_v34 = vpack.c.b16 %v679_v25, %v679_v25 }
  0xf6   : > { %v696_v35 = vpack.c.b16 %v680_v26, %v680_v26  ;;  %v592_v36 = vshrl.u32 %v571_v27, 16  ;;  %v615_v45 = vrot.slane %v613_v32, 7  ;;  %v535_v46 = vmax.f32 %v520_v22, 0.0  ;;  %v3148_v22 = vld [vmem:[#allocation9 + $0x128] sm:$0xff] }
  0xf7   : > { %v689_v42 = vpack.c.b16 %v673_v30, %v673_v30  ;;  %v690_v43 = vpack.c.b16 %v674_v31, %v674_v31  ;;  %728 = vst [vmem:[#allocation2 + $0x28] sm:$0xf] %v695_v34  ;;  %v595_v48 = vshll.u32 %v571_v27, 16  ;;  %v546_v50 = vpack.c.bf16 %v538_v23, %v538_v23  ;;  %v3176_v23 = vld [vmem:[#allocation9 + $0x1e8] sm:$0xff]  ;;  %v3158_v30 = vld [vmem:[#allocation9 + $0x178] sm:$0xff]  ;;  %1616 = vmatpush.bf16.msrb.mxu1 %v3148_v22 }
  0xf8   : > { %v594_v47 = vrot.slane %v592_v36, 7  ;;  %v3103_v51 = vld [vmem:[#allocation2 + $0x4] sm:$0xf0]  ;;  %v529_v53 = vpop.f32.mrf.mxu3  ;;  %v618_v55 = vor.u32 %v616_v33, %v615_v45  ;;  %v543_v56 = vpack.c.bf16 %v535_v46, %v535_v46  ;;  %729 = vst [vmem:[#allocation2 + $0x2c] sm:$0x1] %v696_v35  ;;  %2171 = vmatpush.bf16.msra.mxu0 %v3176_v23  ;;  %1788 = vmatpush.bf16.msrb.mxu2 %v3158_v30 }
  0xf9   : > { %722 = vst [vmem:[#allocation2 + $0x10] sm:$0xf] %v689_v42  ;;  %v2732_v57 = vor.u32 %v3103_v51, %v2731_v37  ;;  %v3806_v58 = vld [vmem:[#allocation2 + $0xc] sm:$0x1]  ;;  %v1095_v59 = vld [vmem:[#allocation2 + $0x8] sm:$0xe]  ;;  %v530_v60 = vadd.f32 %v3748_v5, %v529_v53  ;;  %v567_v63 = vunpack.c.l.b16 %v546_v50  ;;  %v784_v5 = vsel %vm3802_vm11, %v3788_v19, %v3797_v38 }
  0xfa   : > { %723 = vst [vmem:[#allocation2 + $0x14] sm:$0x1] %v690_v43  ;;  %v597_v61 = vor.u32 %v595_v48, %v594_v47  ;;  %v2778_v62 = vrot.slane %v1095_v59, 9  ;;  %v1127_v0 = vrot.slane %v3806_v58, 5  ;;  %v649_v1 = vsel %vm3757_vm6, 0, %v618_v55  ;;  %v3147_v59 = vld [vmem:[#allocation9 + $0x120] sm:$0xff] }
  0xfb   : > { %v564_v2 = vunpack.c.l.b16 %v543_v56  ;;  %1073 = vmatmul.bf16.vlgmr.msra.gmra.mxu2 %v2732_v57  ;;  %v539_v3 = vmax.f32 %v530_v60, 0.0  ;;  %v660_v6 = vsel %vm3764_vm7, %v649_v1, 0  ;;  %v575_v7 = vpack.c.b16 %v567_v63, %v567_v63  ;;  %v737_v17 = vld [vmem:[#allocation2 + $0x8] sm:$0xf]  ;;  %1617 = vmatpush.bf16.msrb.mxu1 %v3147_v59 }
  0xfc   : > { %v646_v4 = vsel %vm3757_vm6, 0, %v597_v61  ;;  %v1128_v8 = vsel %vm3771_vm8, %v2778_v62, %v1127_v0  ;;  %v681_v10 = vunpack.c.l.b16 %v660_v6  ;;  %v682_v11 = vunpack.c.h.b16 %v660_v6  ;;  %v2819_v28 = vld [vmem:[#allocation2 + $0x8] sm:$0xf] }
  0xfd   : > { %v657_v9 = vsel %vm3764_vm7, %v646_v4, 0  ;;  %v572_v12 = vpack.c.b16 %v564_v2, %v564_v2  ;;  %v620_v15 = vshrl.u32 %v575_v7, 16  ;;  %v623_v16 = vshll.u32 %v575_v7, 16  ;;  %v3157_v60 = vld [vmem:[#allocation9 + $0x170] sm:$0xff]  ;;  %v3170_v1 = vld [vmem:[#allocation9 + $0x1b8] sm:$0xff] }
  0xfe   : > { %v675_v13 = vunpack.c.l.b16 %v657_v9  ;;  %v676_v14 = vunpack.c.h.b16 %v657_v9  ;;  %v697_v18 = vpack.c.b16 %v681_v10, %v681_v10  ;;  %v698_v19 = vpack.c.b16 %v682_v11, %v682_v11  ;;  %1789 = vmatpush.bf16.msrb.mxu2 %v3157_v60  ;;  %1923 = vmatpush.bf16.msra.mxu3 %v3170_v1  ;;  %v3169_v11 = vld [vmem:[#allocation9 + $0x1b0] sm:$0xff]  ;;  %v3167_v60 = vld [vmem:[#allocation9 + $0x1a0] sm:$0xff] }
  0xff   : > { %v599_v20 = vshrl.u32 %v572_v12, 16  ;;  %v602_v21 = vshll.u32 %v572_v12, 16  ;;  %v622_v26 = vrot.slane %v620_v15, 7  ;;  %v1171_v27 = vunpack.c.l.b16 %v1128_v8  ;;  %v3854_v44 = vld [vmem:[#allocation2 + $0x2c] sm:$0x1]  ;;  %v3173_v1 = vld [vmem:[#allocation9 + $0x1d0] sm:$0xff] }
 0x100   : > { %v691_v24 = vpack.c.b16 %v675_v13, %v675_v13  ;;  %v692_v25 = vpack.c.b16 %v676_v14, %v676_v14  ;;  %v3131_v29 = vld [vmem:[#allocation2 + $0xc] sm:$0xf0]  ;;  %730 = vst [vmem:[#allocation2 + $0x30] sm:$0xf] %v697_v18  ;;  %v547_v33 = vpack.c.bf16 %v539_v3, %v539_v3  ;;  %v786_v34 = vshrl.u32 %v737_v17, 16  ;;  %v3156_v18 = vld [vmem:[#allocation9 + $0x168] sm:$0xff] }
 0x101   : > { %v601_v31 = vrot.slane %v599_v20, 7  ;;  %v2820_v32 = vor.u32 %v3131_v29, %v2819_v28  ;;  %v3824_v35 = vld [vmem:[#allocation2 + $0x14] sm:$0x1]  ;;  %v625_v36 = vor.u32 %v623_v16, %v622_v26  ;;  %v1178_v37 = vpack.c.b16 %v1171_v27, %v1170_v52  ;;  %v1096_v41 = vld [vmem:[#allocation2 + $0x10] sm:$0xe] }
 0x102   : > { %724 = vst [vmem:[#allocation2 + $0x18] sm:$0xf] %v691_v24  ;;  %v789_v38 = vshll.u32 %v737_v17, 16  ;;  %v3826_v40 = vunpack.c.l.b16 %v784_v5  ;;  %v568_v43 = vunpack.c.l.b16 %v547_v33  ;;  %v788_v45 = vrot.slane %v786_v34, 4  ;;  %v738_v47 = vld [vmem:[#allocation2 + $0x10] sm:$0xf]  ;;  %1924 = vmatpush.bf16.msra.mxu3 %v3169_v11  ;;  %1790 = vmatpush.bf16.msrb.mxu2 %v3156_v18 }
 0x103   : > { %725 = vst [vmem:[#allocation2 + $0x1c] sm:$0x1] %v692_v25  ;;  %v604_v42 = vor.u32 %v602_v21, %v601_v31  ;;  %1376 = vmatmul.bf16.vlgmr.msrb.gmra.mxu0 %v2820_v32  ;;  %v795_v46 = vshll.u32 %v3806_v58, 16  ;;  %v650_v48 = vsel %vm3757_vm6, 0, %v625_v36  ;;  %1242 = vmatmul.bf16.vlgmr.msrb.gmra.mxu3 %v1178_v37  ;;  %v2779_v51 = vrot.slane %v1096_v41, 9  ;;  %v3175_v58 = vld [vmem:[#allocation9 + $0x1e0] sm:$0xff] }
 0x104   : > { %731 = vst [vmem:[#allocation2 + $0x34] sm:$0x1] %v698_v19  ;;  %v791_v50 = vrot.slane %v789_v38, 5  ;;  %v1131_v52 = vrot.slane %v3824_v35, 5  ;;  %v661_v55 = vsel %vm3764_vm7, %v650_v48, 0  ;;  %v576_v56 = vpack.c.b16 %v568_v43, %v568_v43  ;;  %2172 = vmatpush.bf16.msra.mxu0 %v3175_v58  ;;  %v3154_v58 = vld [vmem:[#allocation9 + $0x158] sm:$0xff] }
 0x105   : > { %v647_v53 = vsel %vm3757_vm6, 0, %v604_v42  ;;  %v800_v57 = vshrl.u32 %v738_v47, 16  ;;  %v683_v63 = vunpack.c.l.b16 %v661_v55  ;;  %v684_v62 = vunpack.c.h.b16 %v661_v55  ;;  %v2735_v10 = vld [vmem:[#allocation2 + $0x10] sm:$0xf]  ;;  %v741_v59 = vld [vmem:[#allocation2 + $0x28] sm:$0xf] }
 0x106   : > { %v658_v61 = vsel %vm3764_vm7, %v647_v53, 0  ;;  %v792_v0 = vor.u32 %v791_v50, %v788_v45  ;;  %v627_v5 = vshrl.u32 %v576_v56, 16  ;;  %v630_v4 = vshll.u32 %v576_v56, 16  ;;  %v1099_v45 = vld [vmem:[#allocation2 + $0x28] sm:$0xe]  ;;  %v3168_v53 = vld [vmem:[#allocation9 + $0x1a8] sm:$0xff] }
 0x107   : > { %v677_v2 = vunpack.c.l.b16 %v658_v61  ;;  %v678_v3 = vunpack.c.h.b16 %v658_v61  ;;  %v699_v6 = vpack.c.b16 %v683_v63, %v683_v63  ;;  %v700_v7 = vpack.c.b16 %v684_v62, %v684_v62  ;;  %v3145_v61 = vld [vmem:[#allocation9 + $0x110] sm:$0xff]  ;;  %1925 = vmatpush.bf16.msra.mxu3 %v3168_v53 }
 0x108   : > { %v793_v8 = vrot.slane %v792_v0, 4  ;;  %v797_v9 = vrot.slane %v795_v46, 5  ;;  %v629_v14 = vrot.slane %v627_v5, 7  ;;  %v1132_v17 = vsel %vm3771_vm8, %v2779_v51, %v1131_v52  ;;  %v3146_v46 = vld [vmem:[#allocation9 + $0x118] sm:$0xff] }
 0x109   : > { %v693_v12 = vpack.c.b16 %v677_v2, %v677_v2  ;;  %v694_v13 = vpack.c.b16 %v678_v3, %v678_v3  ;;  %v3104_v15 = vld [vmem:[#allocation2 + $0x14] sm:$0xf0]  ;;  %732 = vst [vmem:[#allocation2 + $0x38] sm:$0xf] %v699_v6  ;;  %v802_v23 = vrot.slane %v800_v57, 4  ;;  %v803_v27 = vshll.u32 %v738_v47, 16  ;;  %1618 = vmatpush.bf16.msrb.mxu1 %v3146_v46 }
 0x10a   : > { %v1097_v16 = vld [vmem:[#allocation2 + $0x18] sm:$0xe]  ;;  %v798_v19 = vsel %vm3802_vm11, %v793_v8, %v797_v9  ;;  %v2736_v20 = vor.u32 %v3104_v15, %v2735_v10  ;;  %v3842_v21 = vld [vmem:[#allocation2 + $0x1c] sm:$0x1]  ;;  %v632_v24 = vor.u32 %v630_v4, %v629_v14  ;;  %v1172_v28 = vunpack.c.l.b16 %v1132_v17  ;;  %733 = vst [vmem:[#allocation2 + $0x3c] sm:$0x1] %v700_v7 }
 0x10b   : > { %v2780_v22 = vrot.slane %v1097_v16, 9  ;;  %726 = vst [vmem:[#allocation2 + $0x20] sm:$0xf] %v693_v12  ;;  %v901_v25 = vunpack.c.l.b16 %v798_v19  ;;  %v1135_v26 = vrot.slane %v3842_v21, 5  ;;  %v739_v29 = vld [vmem:[#allocation2 + $0x18] sm:$0xf]  ;;  %1926 = vmatpush.bf16.msra.mxu3 %v3167_v60 }
 0x10c   : > { %727 = vst [vmem:[#allocation2 + $0x24] sm:$0x1] %v694_v13  ;;  %1078 = vmatmul.bf16.gmra.mxu2 %v2736_v20  ;;  %v651_v30 = vsel %vm3757_vm6, 0, %v632_v24  ;;  %v805_v33 = vrot.slane %v803_v27, 5  ;;  %v809_v37 = vshll.u32 %v3824_v35, 16  ;;  %v814_v38 = vshrl.u32 %v739_v29, 16 }
 0x10d   : > { %v908_v31 = vpack.c.b16 %v901_v25, %v3826_v40  ;;  %v1136_v32 = vsel %vm3771_vm8, %v2780_v22, %v1135_v26  ;;  %v662_v34 = vsel %vm3764_vm7, %v651_v30, 0  ;;  %v817_v39 = vshll.u32 %v739_v29, 16  ;;  %v3174_v40 = vld [vmem:[#allocation9 + $0x1d8] sm:$0xff]  ;;  %v3155_v47 = vld [vmem:[#allocation9 + $0x160] sm:$0xff]  ;;  %1619 = vmatpush.bf16.msrb.mxu1 %v3145_v61  ;;  %v3153_v19 = vld [vmem:[#allocation9 + $0x150] sm:$0xff] }
 0x10e   : > { %v1173_v36 = vunpack.c.l.b16 %v1136_v32  ;;  %v685_v41 = vunpack.c.l.b16 %v662_v34  ;;  %v686_v42 = vunpack.c.h.b16 %v662_v34  ;;  %v806_v43 = vor.u32 %v805_v33, %v802_v23  ;;  %v2823_v50 = vld [vmem:[#allocation2 + $0x18] sm:$0xf]  ;;  %2173 = vmatpush.bf16.msra.mxu0 %v3174_v40  ;;  %1791 = vmatpush.bf16.msrb.mxu2 %v3155_v47  ;;  %v3105_v8 = vld [vmem:[#allocation2 + $0x24] sm:$0xf0] }
 0x10f   : > { %972 = vmatmul.bf16.vlgmr.msra.gmra.mxu1 %v908_v31  ;;  %v816_v51 = vrot.slane %v814_v38, 4  ;;  %v823_v52 = vshll.u32 %v3842_v21, 16  ;;  %v819_v57 = vrot.slane %v817_v39, 5  ;;  %v811_v62 = vrot.slane %v809_v37, 5  ;;  %v3166_v21 = vld [vmem:[#allocation9 + $0x198] sm:$0xff]  ;;  %v3152_v31 = vld [vmem:[#allocation9 + $0x148] sm:$0xff] }
 0x110   : > { %v1179_v48 = vpack.c.b16 %v1173_v36, %v1172_v28  ;;  %v701_v55 = vpack.c.b16 %v685_v41, %v685_v41  ;;  %v702_v35 = vpack.c.b16 %v686_v42, %v686_v42  ;;  %v807_v56 = vrot.slane %v806_v43, 4  ;;  %1927 = vmatpush.bf16.msra.mxu3 %v3166_v21  ;;  %v3165_v32 = vld [vmem:[#allocation9 + $0x190] sm:$0xff]  ;;  %v3133_v41 = vld [vmem:[#allocation2 + $0x2c] sm:$0xf0]  ;;  %v3172_v46 = vld [vmem:[#allocation9 + $0x1c8] sm:$0xff] }
 0x111   : > { %v820_v3 = vor.u32 %v819_v57, %v816_v51  ;;  %v825_v7 = vrot.slane %v823_v52, 5  ;;  %v2782_v9 = vrot.slane %v1099_v45, 9  ;;  %v1143_v14 = vrot.slane %v3854_v44, 5  ;;  %v2827_v38 = vld [vmem:[#allocation2 + $0x28] sm:$0xf]  ;;  %v3144_v45 = vld [vmem:[#allocation9 + $0x108] sm:$0xff] }
 0x112   : > { %v3132_v63 = vld [vmem:[#allocation2 + $0x1c] sm:$0xf0]  ;;  %734 = vst [vmem:[#allocation2 + $0x40] sm:$0xf] %v701_v55  ;;  %v812_v6 = vsel %vm3802_vm11, %v807_v56, %v811_v62  ;;  %v842_v17 = vshrl.u32 %v741_v59, 16  ;;  %v845_v18 = vshll.u32 %v741_v59, 16  ;;  %1792 = vmatpush.bf16.msrb.mxu2 %v3154_v58  ;;  %2174 = vmatpush.bf16.msra.mxu0 %v3173_v1  ;;  %v2828_v62 = vor.u32 %v3133_v41, %v2827_v38 }
 0x113   : > { %v1098_v0 = vld [vmem:[#allocation2 + $0x20] sm:$0xe]  ;;  %v2824_v2 = vor.u32 %v3132_v63, %v2823_v50  ;;  %v3856_v5 = vld [vmem:[#allocation2 + $0x24] sm:$0x1]  ;;  %735 = vst [vmem:[#allocation2 + $0x44] sm:$0x1] %v702_v35  ;;  %1247 = vmatmul.bf16.gmra.mxu3 %v1179_v48  ;;  %v902_v23 = vunpack.c.l.b16 %v812_v6  ;;  %v1144_v26 = vsel %vm3771_vm8, %v2782_v9, %v1143_v14  ;;  %1620 = vmatpush.bf16.msrb.mxu1 %v3144_v45 }
 0x114   : > { %v740_v4 = vld [vmem:[#allocation2 + $0x20] sm:$0xf]  ;;  %v821_v10 = vrot.slane %v820_v3, 4  ;;  %v2781_v12 = vrot.slane %v1098_v0, 9  ;;  %v1139_v13 = vrot.slane %v3856_v5, 5  ;;  %v844_v29 = vrot.slane %v842_v17, 4  ;;  %1928 = vmatpush.bf16.msra.mxu3 %v3165_v32 }
 0x115   : > { %1381 = vmatmul.bf16.gmra.mxu0 %v2824_v2  ;;  %v2739_v11 = vld [vmem:[#allocation2 + $0x20] sm:$0xf]  ;;  %v828_v15 = vshrl.u32 %v740_v4, 16  ;;  %v831_v16 = vshll.u32 %v740_v4, 16  ;;  %v847_v30 = vrot.slane %v845_v18, 5  ;;  %v1175_v36 = vunpack.c.l.b16 %v1144_v26  ;;  %v3151_v40 = vld [vmem:[#allocation9 + $0x140] sm:$0xff] }
 0x116   : > { %v826_v20 = vsel %vm3802_vm11, %v821_v10, %v825_v7  ;;  %v2740_v24 = vor.u32 %v3105_v8, %v2739_v11  ;;  %v1140_v25 = vsel %vm3771_vm8, %v2781_v12, %v1139_v13  ;;  %1793 = vmatpush.bf16.msrb.mxu2 %v3153_v19  ;;  %v851_v37 = vshll.u32 %v3854_v44, 16  ;;  %v742_v39 = vld [vmem:[#allocation2 + $0x30] sm:$0xf]  ;;  %v3870_v48 = vld [vmem:[#allocation2 + $0x34] sm:$0x1]  ;;  %v3164_v52 = vld [vmem:[#allocation9 + $0x188] sm:$0xff]  ;;  %2175 = vmatpush.bf16.msra.mxu0 %v3172_v46 }
 0x117   : > { %v903_v22 = vunpack.c.l.b16 %v826_v20  ;;  %v830_v27 = vrot.slane %v828_v15, 4  ;;  %v833_v28 = vrot.slane %v831_v16, 5  ;;  %v1174_v34 = vunpack.c.l.b16 %v1140_v25  ;;  %v3872_v50 = vld [vmem:[#allocation2 + $0x3c] sm:$0x1]  ;;  %v743_v51 = vld [vmem:[#allocation2 + $0x38] sm:$0xf] }
 0x118   : > { %v848_v43 = vor.u32 %v847_v30, %v844_v29  ;;  %v837_v47 = vshll.u32 %v3856_v5, 16  ;;  %v853_v53 = vrot.slane %v851_v37, 5  ;;  %v1100_v55 = vld [vmem:[#allocation2 + $0x30] sm:$0xe]  ;;  %v1101_v35 = vld [vmem:[#allocation2 + $0x38] sm:$0xe]  ;;  %1929 = vmatpush.bf16.msra.mxu3 %v3164_v52 }
 0x119   : > { %v909_v33 = vpack.c.b16 %v903_v22, %v902_v23  ;;  %v834_v42 = vor.u32 %v833_v28, %v830_v27  ;;  %v1180_v44 = vpack.c.b16 %v1175_v36, %v1174_v34  ;;  %v3143_v56 = vld [vmem:[#allocation9 + $0x100] sm:$0xff]  ;;  %v856_v58 = vshrl.u32 %v742_v39, 16  ;;  %v1651_v15 = vld [vmem:[#allocation2 + $0x8] sm:$0xe]  ;;  %v3880_v17 = vld [vmem:[#allocation2 + $0xc] sm:$0x1] }
 0x11a   : > { %1794 = vmatpush.bf16.msrb.mxu2 %v3152_v31  ;;  %v849_v59 = vrot.slane %v848_v43, 4  ;;  %v859_v60 = vshll.u32 %v742_v39, 16  ;;  %v3163_v61 = vld [vmem:[#allocation9 + $0x180] sm:$0xff]  ;;  %v870_v0 = vshrl.u32 %v743_v51, 16  ;;  %v873_v1 = vshll.u32 %v743_v51, 16  ;;  %1621 = vmatpush.bf16.msrb.mxu1 %v3143_v56  ;;  %v3186_v52 = vld [vmem:[#allocation9 + $0x238] sm:$0xff] }
 0x11b   : > { %v835_v57 = vrot.slane %v834_v42, 4  ;;  %v3171_v63 = vld [vmem:[#allocation9 + $0x1c0] sm:$0xff]  ;;  %v839_v2 = vrot.slane %v837_v47, 5  ;;  %v2783_v4 = vrot.slane %v1100_v55, 9  ;;  %v1147_v6 = vrot.slane %v3870_v48, 5 }
 0x11c   : > { %1083 = vmatmul.bf16.gmra.mxu2 %v2740_v24  ;;  %v2743_v3 = vld [vmem:[#allocation2 + $0x30] sm:$0xf]  ;;  %v3106_v5 = vld [vmem:[#allocation2 + $0x34] sm:$0xf0]  ;;  %v2784_v7 = vrot.slane %v1101_v35, 9  ;;  %v1151_v8 = vrot.slane %v3872_v50, 5  ;;  %v854_v10 = vsel %vm3802_vm11, %v849_v59, %v853_v53  ;;  %1930 = vmatpush.bf16.msra.mxu3 %v3163_v61 }
 0x11d   : > { %v840_v9 = vsel %vm3802_vm11, %v835_v57, %v839_v2  ;;  %v858_v11 = vrot.slane %v856_v58, 4  ;;  %v861_v12 = vrot.slane %v859_v60, 5  ;;  %2176 = vmatpush.bf16.msra.mxu0 %v3171_v63  ;;  %v872_v13 = vrot.slane %v870_v0, 4  ;;  %v3882_v18 = vld [vmem:[#allocation2 + $0x14] sm:$0x1]  ;;  %v3185_v63 = vld [vmem:[#allocation9 + $0x230] sm:$0xff] }
 0x11e   : > { %1795 = vmatpush.bf16.msrb.mxu2 %v3151_v40  ;;  %v875_v14 = vrot.slane %v873_v1, 5  ;;  %v2744_v16 = vor.u32 %v3106_v5, %v2743_v3  ;;  %v1652_v19 = vld [vmem:[#allocation2 + $0x10] sm:$0xe]  ;;  %v904_v20 = vunpack.c.l.b16 %v840_v9  ;;  %v905_v21 = vunpack.c.l.b16 %v854_v10  ;;  %v1962_v25 = vld [vmem:[#allocation2 + $0x18] sm:$0xf]  ;;  %3204 = vmatpush.bf16.msra.mxu1 %v3186_v52 }
 0x11f   : > { %977 = vmatmul.bf16.gmra.mxu1 %v909_v33  ;;  %v1148_v22 = vsel %vm3771_vm8, %v2783_v4, %v1147_v6  ;;  %v1152_v23 = vsel %vm3771_vm8, %v2784_v7, %v1151_v8  ;;  %v1960_v24 = vld [vmem:[#allocation2 + $0x10] sm:$0xf]  ;;  %v862_v26 = vor.u32 %v861_v12, %v858_v11  ;;  %v865_v27 = vshll.u32 %v3870_v48, 16  ;;  %v2831_v39 = vld [vmem:[#allocation2 + $0x38] sm:$0xf] }
 0x120   : > { %v879_v28 = vshll.u32 %v3872_v50, 16  ;;  %v2897_v29 = vrot.slane %v1651_v15, 9  ;;  %v876_v30 = vor.u32 %v875_v14, %v872_v13  ;;  %v1677_v31 = vrot.slane %v3880_v17, 5  ;;  %v3134_v40 = vld [vmem:[#allocation2 + $0x3c] sm:$0xf0] }
 0x121   : > { %v2898_v32 = vrot.slane %v1652_v19, 9  ;;  %v1681_v33 = vrot.slane %v3882_v18, 5  ;;  %v1977_v34 = vshrl.u32 %v1960_v24, 16  ;;  %v1980_v36 = vshll.u32 %v1960_v24, 16  ;;  %v3898_v57 = vld [vmem:[#allocation2 + $0x1c] sm:$0x1]  ;;  %2343 = vmatpush.bf16.msrb.mxu0 %v3186_v52 }
 0x122   : > { %v1991_v37 = vshrl.u32 %v1962_v25, 16  ;;  %v1994_v38 = vshll.u32 %v1962_v25, 16  ;;  %v910_v41 = vpack.c.b16 %v905_v21, %v904_v20  ;;  %v1176_v42 = vunpack.c.l.b16 %v1148_v22  ;;  %v1405_v60 = vld [vmem:[#allocation2 + $0x8] sm:$0xf]  ;;  %v1407_v61 = vld [vmem:[#allocation2 + $0x10] sm:$0xf]  ;;  %3205 = vmatpush.bf16.msra.mxu1 %v3185_v63 }
 0x123   : > { %1252 = vmatmul.bf16.gmra.mxu3 %v1180_v44  ;;  %v1177_v43 = vunpack.c.l.b16 %v1152_v23  ;;  %v863_v45 = vrot.slane %v862_v26, 4  ;;  %v867_v46 = vrot.slane %v865_v27, 5  ;;  %v877_v47 = vrot.slane %v876_v30, 4  ;;  %v3896_v44 = vld [vmem:[#allocation2 + $0x14] sm:$0x1] }
 0x124   : > { %v881_v48 = vrot.slane %v879_v28, 5  ;;  %v1678_v50 = vsel %vm3771_vm8, %v2897_v29, %v1677_v31  ;;  %v1682_v51 = vsel %vm3771_vm8, %v2898_v32, %v1681_v33  ;;  %v1979_v53 = vrot.slane %v1977_v34, 4  ;;  %v1964_v14 = vld [vmem:[#allocation2 + $0x20] sm:$0xf]  ;;  %v1966_v15 = vld [vmem:[#allocation2 + $0x28] sm:$0xf] }
 0x125   : > { %1386 = vmatmul.bf16.gmra.mxu0 %v2828_v62  ;;  %v1982_v55 = vrot.slane %v1980_v36, 5  ;;  %v1993_v35 = vrot.slane %v1991_v37, 4  ;;  %v1996_v56 = vrot.slane %v1994_v38, 5  ;;  %v1181_v59 = vpack.c.b16 %v1177_v43, %v1176_v42  ;;  %v3906_v26 = vld [vmem:[#allocation2 + $0x24] sm:$0x1] }
 0x126   : > { %v2832_v58 = vor.u32 %v3134_v40, %v2831_v39  ;;  %v868_v62 = vsel %vm3802_vm11, %v863_v45, %v867_v46  ;;  %v1724_v0 = vunpack.c.l.b16 %v1678_v50  ;;  %v1725_v1 = vunpack.c.l.b16 %v1682_v51  ;;  %2344 = vmatpush.bf16.msrb.mxu0 %v3185_v63  ;;  %v1654_v27 = vld [vmem:[#allocation2 + $0x20] sm:$0xe]  ;;  %v3159_v33 = vld [vmem:[#allocation2 + $0x14] sm:$0xf0]  ;;  %v2939_v45 = vld [vmem:[#allocation2 + $0x10] sm:$0xf] }
 0x127   : > { %v1986_v2 = vshll.u32 %v3896_v44, 16  ;;  %v882_v3 = vsel %vm3802_vm11, %v877_v47, %v881_v48  ;;  %v1983_v5 = vor.u32 %v1982_v55, %v1979_v53  ;;  %v1997_v4 = vor.u32 %v1996_v56, %v1993_v35  ;;  %v1653_v42 = vld [vmem:[#allocation2 + $0x18] sm:$0xe]  ;;  %v1411_v53 = vld [vmem:[#allocation2 + $0x20] sm:$0xf] }
 0x128   : > { %v2000_v6 = vshll.u32 %v3898_v57, 16  ;;  %v1422_v7 = vshrl.u32 %v1405_v60, 16  ;;  %v1425_v8 = vshll.u32 %v1405_v60, 16  ;;  %v1436_v9 = vshrl.u32 %v1407_v61, 16  ;;  %v3184_v55 = vld [vmem:[#allocation9 + $0x228] sm:$0xff] }
 0x129   : > { %v1439_v10 = vshll.u32 %v1407_v61, 16  ;;  %v906_v11 = vunpack.c.l.b16 %v868_v62  ;;  %v1732_v12 = vpack.c.b16 %v1725_v1, %v1724_v0  ;;  %v1988_v13 = vrot.slane %v1986_v2, 5  ;;  %v3918_v60 = vld [vmem:[#allocation2 + $0x24] sm:$0x1]  ;;  %v3920_v61 = vld [vmem:[#allocation2 + $0x2c] sm:$0x1]  ;;  %3206 = vmatpush.bf16.msra.mxu1 %v3184_v55 }
 0x12a   : > { %v1984_v19 = vrot.slane %v1983_v5, 4  ;;  %v1998_v20 = vrot.slane %v1997_v4, 4  ;;  %v2002_v21 = vrot.slane %v2000_v6, 5  ;;  %v1424_v22 = vrot.slane %v1422_v7, 4  ;;  %v1409_v1 = vld [vmem:[#allocation2 + $0x18] sm:$0xf]  ;;  %2345 = vmatpush.bf16.msrb.mxu0 %v3184_v55 }
 0x12b   : > { %v1427_v23 = vrot.slane %v1425_v8, 5  ;;  %v1438_v24 = vrot.slane %v1436_v9, 4  ;;  %v1441_v25 = vrot.slane %v1439_v10, 5  ;;  %v2005_v28 = vshrl.u32 %v1964_v14, 16  ;;  %v3183_v4 = vld [vmem:[#allocation9 + $0x220] sm:$0xff] }
 0x12c   : > { %1088 = vmatmul.bf16.gmra.mxu2 %v2744_v16  ;;  %v907_v16 = vunpack.c.l.b16 %v882_v3  ;;  %v2008_v29 = vshll.u32 %v1964_v14, 16  ;;  %v2019_v30 = vshrl.u32 %v1966_v15, 16  ;;  %v2022_v31 = vshll.u32 %v1966_v15, 16 }
 0x12d   : > { %v1989_v34 = vsel %vm3802_vm11, %v1984_v19, %v1988_v13  ;;  %v2003_v36 = vsel %vm3802_vm11, %v1998_v20, %v2002_v21  ;;  %v1428_v37 = vor.u32 %v1427_v23, %v1424_v22  ;;  %v1442_v38 = vor.u32 %v1441_v25, %v1438_v24  ;;  %3207 = vmatpush.bf16.msra.mxu1 %v3183_v4  ;;  %v1968_v24 = vld [vmem:[#allocation2 + $0x30] sm:$0xf] }
 0x12e   : > { %v911_v32 = vpack.c.b16 %v907_v16, %v906_v11  ;;  %v2900_v43 = vrot.slane %v1654_v27, 9  ;;  %v1689_v39 = vrot.slane %v3906_v26, 5  ;;  %v2007_v46 = vrot.slane %v2005_v28, 4  ;;  %2346 = vmatpush.bf16.msrb.mxu0 %v3183_v4 }
 0x12f   : > { %982 = vmatmul.bf16.gmra.mxu1 %v910_v41  ;;  %v3912_v41 = vld [vmem:[#allocation2 + $0x1c] sm:$0x1]  ;;  %v2010_v40 = vrot.slane %v2008_v29, 5  ;;  %v2021_v47 = vrot.slane %v2019_v30, 4  ;;  %v2024_v48 = vrot.slane %v2022_v31, 5  ;;  %v2106_v50 = vunpack.c.l.b16 %v2003_v36 }
 0x130   : > { %v1431_v51 = vshll.u32 %v3880_v17, 16  ;;  %v1445_v52 = vshll.u32 %v3882_v18, 16  ;;  %v2940_v35 = vor.u32 %v3159_v33, %v2939_v45  ;;  %v2105_v56 = vunpack.c.l.b16 %v1989_v34  ;;  %v1970_v30 = vld [vmem:[#allocation2 + $0x38] sm:$0xf] }
 0x131   : > { %v1429_v63 = vrot.slane %v1428_v37, 4  ;;  %v1443_v62 = vrot.slane %v1442_v38, 4  ;;  %v1690_v0 = vsel %vm3771_vm8, %v2900_v43, %v1689_v39  ;;  %v2028_v17 = vshll.u32 %v3920_v61, 16  ;;  %v3936_v37 = vld [vmem:[#allocation2 + $0x2c] sm:$0x1] }
 0x132   : > { %v2011_v18 = vor.u32 %v2010_v40, %v2007_v46  ;;  %v2025_v2 = vor.u32 %v2024_v48, %v2021_v47  ;;  %v1464_v3 = vshrl.u32 %v1411_v53, 16  ;;  %v1467_v5 = vshll.u32 %v1411_v53, 16  ;;  %v3938_v38 = vld [vmem:[#allocation2 + $0x34] sm:$0x1]  ;;  %v1656_v43 = vld [vmem:[#allocation2 + $0x30] sm:$0xe] }
 0x133   : > { %1257 = vmatmul.bf16.gmra.mxu3 %v1181_v59  ;;  %v2899_v59 = vrot.slane %v1653_v42, 9  ;;  %v2113_v6 = vpack.c.b16 %v2106_v50, %v2105_v56  ;;  %v1433_v7 = vrot.slane %v1431_v51, 5  ;;  %v1447_v8 = vrot.slane %v1445_v52, 5  ;;  %v1655_v42 = vld [vmem:[#allocation2 + $0x28] sm:$0xe] }
 0x134   : > { %v2014_v10 = vshll.u32 %v3918_v60, 16  ;;  %v1450_v11 = vshrl.u32 %v1409_v1, 16  ;;  %v1727_v15 = vunpack.c.l.b16 %v1690_v0  ;;  %v2030_v16 = vrot.slane %v2028_v17, 5  ;;  %v2943_v48 = vld [vmem:[#allocation2 + $0x20] sm:$0xf] }
 0x135   : > { %1391 = vmatmul.bf16.gmra.mxu0 %v2832_v58  ;;  %v1685_v58 = vrot.slane %v3912_v41, 5  ;;  %v1434_v13 = vsel %vm3802_vm11, %v1429_v63, %v1433_v7  ;;  %v1448_v14 = vsel %vm3802_vm11, %v1443_v62, %v1447_v8  ;;  %v2012_v19 = vrot.slane %v2011_v18, 4  ;;  %v3160_v52 = vld [vmem:[#allocation2 + $0x24] sm:$0xf0]  ;;  %v3944_v0 = vld [vmem:[#allocation2 + $0x34] sm:$0x1] }
 0x136   : > { %v2026_v20 = vrot.slane %v2025_v2, 4  ;;  %v1466_v21 = vrot.slane %v1464_v3, 4  ;;  %v1469_v22 = vrot.slane %v1467_v5, 5  ;;  %v1551_v25 = vunpack.c.l.b16 %v1448_v14  ;;  %v3946_v5 = vld [vmem:[#allocation2 + $0x3c] sm:$0x1]  ;;  %v3181_v14 = vld [vmem:[#allocation9 + $0x210] sm:$0xff] }
 0x137   : > { %v1686_v9 = vsel %vm3771_vm8, %v2899_v59, %v1685_v58  ;;  %v2016_v27 = vrot.slane %v2014_v10, 5  ;;  %v1452_v28 = vrot.slane %v1450_v11, 4  ;;  %v1550_v31 = vunpack.c.l.b16 %v1434_v13  ;;  %v1413_v7 = vld [vmem:[#allocation2 + $0x28] sm:$0xf]  ;;  %v2206_v8 = vld [vmem:[#allocation2 + $0x10] sm:$0xe] }
 0x138   : > { %v1726_v23 = vunpack.c.l.b16 %v1686_v9  ;;  %v2031_v34 = vsel %vm3802_vm11, %v2026_v20, %v2030_v16  ;;  %v1470_v36 = vor.u32 %v1469_v22, %v1466_v21  ;;  %v2033_v39 = vshrl.u32 %v1968_v24, 16  ;;  %v1415_v13 = vld [vmem:[#allocation2 + $0x30] sm:$0xf]  ;;  %v2207_v21 = vld [vmem:[#allocation2 + $0x18] sm:$0xe] }
 0x139   : > { %v2017_v33 = vsel %vm3802_vm11, %v2012_v19, %v2016_v27  ;;  %v2036_v45 = vshll.u32 %v1968_v24, 16  ;;  %v2047_v46 = vshrl.u32 %v1970_v30, 16  ;;  %v2050_v40 = vshll.u32 %v1970_v30, 16 }
 0x13a   : > { %v1558_v47 = vpack.c.b16 %v1551_v25, %v1550_v31  ;;  %v1459_v51 = vshll.u32 %v3912_v41, 16  ;;  %v2107_v53 = vunpack.c.l.b16 %v2017_v33  ;;  %v1473_v55 = vshll.u32 %v3906_v26, 16  ;;  %v3182_v41 = vld [vmem:[#allocation9 + $0x218] sm:$0xff] }
 0x13b   : > { %v1693_v56 = vrot.slane %v3936_v37, 5  ;;  %v2108_v59 = vunpack.c.l.b16 %v2031_v34  ;;  %v1471_v58 = vrot.slane %v1470_v36, 4  ;;  %v2902_v63 = vrot.slane %v1656_v43, 9  ;;  %2347 = vmatpush.bf16.msrb.mxu0 %v3182_v41  ;;  %3208 = vmatpush.bf16.msra.mxu1 %v3182_v41 }
 0x13c   : > { %1796 = vmatmul.bf16.vlgmr.msrb.gmra.mxu2 %v1732_v12  ;;  %v1453_v12 = vshll.u32 %v1409_v1, 16  ;;  %v1697_v62 = vrot.slane %v3938_v38, 5  ;;  %v2035_v17 = vrot.slane %v2033_v39, 4  ;;  %v2038_v1 = vrot.slane %v2036_v45, 5 }
 0x13d   : > { %v2049_v18 = vrot.slane %v2047_v46, 4  ;;  %v2052_v2 = vrot.slane %v2050_v40, 5  ;;  %v2944_v26 = vor.u32 %v3160_v52, %v2943_v48  ;;  %v1475_v4 = vrot.slane %v1473_v55, 5  ;;  %v1972_v40 = vld [vmem:[#allocation2 + $0x40] sm:$0xf] }
 0x13e   : > { %v1455_v29 = vrot.slane %v1453_v12, 5  ;;  %v2114_v9 = vpack.c.b16 %v2108_v59, %v2107_v53  ;;  %v1461_v10 = vrot.slane %v1459_v51, 5  ;;  %v1698_v11 = vsel %vm3771_vm8, %v2902_v63, %v1697_v62  ;;  %v1974_v52 = vld [vmem:[#allocation2 + $0x48] sm:$0xf]  ;;  %v3964_v55 = vld [vmem:[#allocation2 + $0x3c] sm:$0x1] }
 0x13f   : > { %987 = vmatmul.bf16.gmra.mxu1 %v911_v32  ;;  %v1733_v32 = vpack.c.b16 %v1727_v15, %v1726_v23  ;;  %v2042_v12 = vshll.u32 %v3944_v0, 16  ;;  %v1476_v15 = vsel %vm3802_vm11, %v1471_v58, %v1475_v4  ;;  %v2039_v16 = vor.u32 %v2038_v1, %v2035_v17  ;;  %2348 = vmatpush.bf16.msrb.mxu0 %v3181_v14  ;;  %v1657_v62 = vld [vmem:[#allocation2 + $0x38] sm:$0xe]  ;;  %v1658_v17 = vld [vmem:[#allocation2 + $0x40] sm:$0xe] }
 0x140   : > { %v1456_v50 = vor.u32 %v1455_v29, %v1452_v28  ;;  %v2053_v19 = vor.u32 %v2052_v2, %v2049_v18  ;;  %v2056_v20 = vshll.u32 %v3946_v5, 16  ;;  %v1478_v24 = vshrl.u32 %v1413_v7, 16  ;;  %3209 = vmatpush.bf16.msra.mxu1 %v3181_v14 }
 0x141   : > { %v3017_v25 = vrot.slane %v2206_v8, 9  ;;  %v1729_v27 = vunpack.c.l.b16 %v1698_v11  ;;  %v1481_v28 = vshll.u32 %v1413_v7, 16  ;;  %v1492_v29 = vshrl.u32 %v1415_v13, 16 }
 0x142   : > { %v1457_v3 = vrot.slane %v1456_v50, 4  ;;  %v1495_v30 = vshll.u32 %v1415_v13, 16  ;;  %v1553_v31 = vunpack.c.l.b16 %v1476_v15  ;;  %v2232_v33 = vrot.slane %v3896_v44, 5  ;;  %v3161_v13 = vld [vmem:[#allocation2 + $0x34] sm:$0xf0] }
 0x143   : > { %1931 = vmatmul.bf16.vlgmr.msra.gmra.mxu3 %v2940_v35  ;;  %v2901_v35 = vrot.slane %v1655_v42, 9  ;;  %v3018_v34 = vrot.slane %v2207_v21, 9  ;;  %v2040_v36 = vrot.slane %v2039_v16, 4  ;;  %v2054_v42 = vrot.slane %v2053_v19, 4  ;;  %v3180_v16 = vld [vmem:[#allocation9 + $0x208] sm:$0xff] }
 0x144   : > { %v1462_v22 = vsel %vm3802_vm11, %v1457_v3, %v1461_v10  ;;  %v2058_v43 = vrot.slane %v2056_v20, 5  ;;  %v2236_v39 = vrot.slane %v3898_v57, 5  ;;  %v1480_v46 = vrot.slane %v1478_v24, 4  ;;  %v3978_v19 = vld [vmem:[#allocation2 + $0x44] sm:$0x1]  ;;  %2349 = vmatpush.bf16.msrb.mxu0 %v3180_v16  ;;  %3210 = vmatpush.bf16.msra.mxu1 %v3180_v16 }
 0x145   : > { %2177 = vmatmul.bf16.vlgmr.msra.gmra.mxu0 %v2113_v6  ;;  %v1694_v6 = vsel %vm3771_vm8, %v2901_v35, %v1693_v56  ;;  %v1552_v45 = vunpack.c.l.b16 %v1462_v22  ;;  %v1483_v48 = vrot.slane %v1481_v28, 5  ;;  %v1494_v50 = vrot.slane %v1492_v29, 4  ;;  %v3966_v35 = vld [vmem:[#allocation2 + $0x44] sm:$0x1] }
 0x146   : > { %v1728_v23 = vunpack.c.l.b16 %v1694_v6  ;;  %v1497_v51 = vrot.slane %v1495_v30, 5  ;;  %v2237_v53 = vsel %vm3771_vm8, %v3018_v34, %v2236_v39  ;;  %v2059_v63 = vsel %vm3802_vm11, %v2054_v42, %v2058_v43  ;;  %v1419_v34 = vld [vmem:[#allocation2 + $0x40] sm:$0xf] }
 0x147   : > { %v2280_v57 = vunpack.c.l.b16 %v2237_v53  ;;  %v1559_v59 = vpack.c.b16 %v1553_v31, %v1552_v45  ;;  %v2061_v1 = vshrl.u32 %v1972_v40, 16  ;;  %v2064_v18 = vshll.u32 %v1972_v40, 16  ;;  %v3179_v31 = vld [vmem:[#allocation9 + $0x200] sm:$0xff] }
 0x148   : > { %v1734_v44 = vpack.c.b16 %v1729_v27, %v1728_v23  ;;  %v2075_v2 = vshrl.u32 %v1974_v52, 16  ;;  %v2078_v41 = vshll.u32 %v1974_v52, 16  ;;  %v1487_v4 = vshll.u32 %v3936_v37, 16  ;;  %v3980_v27 = vld [vmem:[#allocation2 + $0x4c] sm:$0x1]  ;;  %3211 = vmatpush.bf16.msra.mxu1 %v3179_v31  ;;  %2350 = vmatpush.bf16.msrb.mxu0 %v3179_v31 }
 0x149   : > { %v1498_v6 = vor.u32 %v1497_v51, %v1494_v50  ;;  %v1501_v7 = vshll.u32 %v3938_v38, 16  ;;  %v2903_v8 = vrot.slane %v1657_v62, 9  ;;  %v2904_v10 = vrot.slane %v1658_v17, 9 }
 0x14a   : > { %v1705_v11 = vrot.slane %v3966_v35, 5  ;;  %v2110_v15 = vunpack.c.l.b16 %v2059_v63  ;;  %v2063_v20 = vrot.slane %v2061_v1, 4  ;;  %v2066_v21 = vrot.slane %v2064_v18, 5 }
 0x14b   : > { %v2077_v37 = vrot.slane %v2075_v2, 4  ;;  %v2080_v22 = vrot.slane %v2078_v41, 5  ;;  %v1489_v38 = vrot.slane %v1487_v4, 5  ;;  %v1499_v24 = vrot.slane %v1498_v6, 4  ;;  %v2951_v4 = vld [vmem:[#allocation2 + $0x40] sm:$0xf] }
 0x14c   : > { %1801 = vmatmul.bf16.gmra.mxu2 %v1733_v32  ;;  %v2044_v32 = vrot.slane %v2042_v12, 5  ;;  %v2947_v12 = vld [vmem:[#allocation2 + $0x30] sm:$0xf]  ;;  %v1706_v30 = vsel %vm3771_vm8, %v2904_v10, %v1705_v11  ;;  %v2070_v42 = vshll.u32 %v3978_v19, 16  ;;  %v2084_v39 = vshll.u32 %v3980_v27, 16 }
 0x14d   : > { %v2948_v28 = vor.u32 %v3161_v13, %v2947_v12  ;;  %v2081_v43 = vor.u32 %v2080_v22, %v2077_v37  ;;  %v1520_v51 = vshrl.u32 %v1419_v34, 16  ;;  %v1523_v52 = vshll.u32 %v1419_v34, 16  ;;  %v3162_v6 = vld [vmem:[#allocation2 + $0x44] sm:$0xf0] }
 0x14e   : > { %v2045_v58 = vsel %vm3802_vm11, %v2040_v36, %v2044_v32  ;;  %v2067_v36 = vor.u32 %v2066_v21, %v2063_v20  ;;  %v1529_v10 = vshll.u32 %v3966_v35, 16  ;;  %v2952_v13 = vor.u32 %v3162_v6, %v2951_v4  ;;  %v2213_v6 = vld [vmem:[#allocation2 + $0x48] sm:$0xe] }
 0x14f   : > { %1622 = vmatmul.bf16.vlgmr.msrb.gmra.mxu1 %v1558_v47  ;;  %v2233_v47 = vsel %vm3771_vm8, %v3017_v25, %v2232_v33  ;;  %v2109_v14 = vunpack.c.l.b16 %v2045_v58  ;;  %v1503_v25 = vrot.slane %v1501_v7, 5  ;;  %v1417_v33 = vld [vmem:[#allocation2 + $0x38] sm:$0xf]  ;;  %v1522_v1 = vrot.slane %v1520_v51, 4 }
 0x150   : > { %v2279_v56 = vunpack.c.l.b16 %v2233_v47  ;;  %v1731_v47 = vunpack.c.l.b16 %v1706_v30  ;;  %v1509_v50 = vshll.u32 %v1417_v33, 16  ;;  %v2068_v53 = vrot.slane %v2067_v36, 4 }
 0x151   : > { %v2115_v32 = vpack.c.b16 %v2110_v15, %v2109_v14  ;;  %v1525_v18 = vrot.slane %v1523_v52, 5  ;;  %v1531_v20 = vrot.slane %v1529_v10, 5  ;;  %v2244_v30 = vrot.slane %v3920_v61, 5 }
 0x152   : > { %v3972_v3 = vpack.c.b16 %v2280_v57, %v2279_v56  ;;  %v2082_v56 = vrot.slane %v2081_v43, 4  ;;  %v2086_v57 = vrot.slane %v2084_v39, 5  ;;  %v1511_v17 = vrot.slane %v1509_v50, 5 }
 0x153   : > { %1936 = vmatmul.bf16.gmra.mxu3 %v2944_v26  ;;  %v1484_v26 = vor.u32 %v1483_v48, %v1480_v46  ;;  %v1504_v46 = vsel %vm3802_vm11, %v1499_v24, %v1503_v25  ;;  %v1506_v48 = vshrl.u32 %v1417_v33, 16  ;;  %v2208_v24 = vld [vmem:[#allocation2 + $0x20] sm:$0xe]  ;;  %v2209_v25 = vld [vmem:[#allocation2 + $0x28] sm:$0xe]  ;;  %v2248_v52 = vrot.slane %v3944_v0, 5 }
 0x154   : > { %v1555_v58 = vunpack.c.l.b16 %v1504_v46  ;;  %v2087_v41 = vsel %vm3802_vm11, %v2082_v56, %v2086_v57  ;;  %v3019_v31 = vrot.slane %v2208_v24, 9  ;;  %v3024_v10 = vrot.slane %v2213_v6, 9 }
 0x155   : > { %2182 = vmatmul.bf16.gmra.mxu0 %v2114_v9  ;;  %v1701_v9 = vrot.slane %v3964_v55, 5  ;;  %v1485_v23 = vrot.slane %v1484_v26, 4  ;;  %v1508_v62 = vrot.slane %v1506_v48, 4  ;;  %v2112_v12 = vunpack.c.l.b16 %v2087_v41  ;;  %v2210_v48 = vld [vmem:[#allocation2 + $0x30] sm:$0xe] }
 0x156   : > { %v3021_v51 = vrot.slane %v2210_v48, 9 }
 0x157   : > { %v1702_v29 = vsel %vm3771_vm8, %v2903_v8, %v1701_v9  ;;  %v1490_v45 = vsel %vm3802_vm11, %v1485_v23, %v1489_v38  ;;  %v1512_v7 = vor.u32 %v1511_v17, %v1508_v62  ;;  %v1515_v8 = vshll.u32 %v3964_v55, 16 }
 0x158   : > { %v1730_v40 = vunpack.c.l.b16 %v1702_v29  ;;  %v1526_v9 = vor.u32 %v1525_v18, %v1522_v1  ;;  %v2240_v29 = vrot.slane %v3918_v60, 5  ;;  %v2249_v57 = vsel %vm3771_vm8, %v3021_v51, %v2248_v52 }
 0x159   : > { %v1513_v14 = vrot.slane %v1512_v7, 4  ;;  %v1517_v15 = vrot.slane %v1515_v8, 5  ;;  %v2283_v62 = vunpack.c.l.b16 %v2249_v57 }
 0x15a   : > { %v1735_v63 = vpack.c.b16 %v1731_v47, %v1730_v40  ;;  %v1527_v16 = vrot.slane %v1526_v9, 4  ;;  %v2241_v54 = vsel %vm3771_vm8, %v3019_v31, %v2240_v29  ;;  %v2256_v9 = vrot.slane %v3978_v19, 5 }
 0x15b   : > { %v1518_v37 = vsel %vm3802_vm11, %v1513_v14, %v1517_v15  ;;  %v2281_v43 = vunpack.c.l.b16 %v2241_v54 }
 0x15c   : > { %1806 = vmatmul.bf16.gmra.mxu2 %v1734_v44  ;;  %v2072_v44 = vrot.slane %v2070_v42, 5  ;;  %v1532_v55 = vsel %vm3802_vm11, %v1527_v16, %v1531_v20  ;;  %v1556_v22 = vunpack.c.l.b16 %v1518_v37 }
 0x15d   : > { %v1557_v23 = vunpack.c.l.b16 %v1532_v55 }
 0x15e   : > { %v2073_v2 = vsel %vm3802_vm11, %v2068_v53, %v2072_v44  ;;  %v2252_v44 = vrot.slane %v3946_v5, 5  ;;  %v2212_v5 = vld [vmem:[#allocation2 + $0x40] sm:$0xe] }
 0x15f   : > { %1627 = vmatmul.bf16.gmra.mxu1 %v1559_v59  ;;  %v1554_v59 = vunpack.c.l.b16 %v1490_v45  ;;  %v2111_v11 = vunpack.c.l.b16 %v2073_v2  ;;  %v1561_v35 = vpack.c.b16 %v1557_v23, %v1556_v22  ;;  %v3023_v8 = vrot.slane %v2212_v5, 9 }
 0x161   : > { %v1560_v26 = vpack.c.b16 %v1555_v58, %v1554_v59  ;;  %v2116_v21 = vpack.c.b16 %v2112_v12, %v2111_v11  ;;  %v2260_v11 = vrot.slane %v3980_v27, 5 }
 0x163   : > { %1941 = vmatmul.bf16.gmra.mxu3 %v2948_v28  ;;  %v2261_v14 = vsel %vm3771_vm8, %v3024_v10, %v2260_v11 }
 0x164   : > { %v2286_v55 = vunpack.c.l.b16 %v2261_v14 }
 0x165   : > { %2187 = vmatmul.bf16.gmra.mxu0 %v2115_v32  ;;  %v3020_v32 = vrot.slane %v2209_v25, 9 }
 0x167   : > { %v2245_v34 = vsel %vm3771_vm8, %v3020_v32, %v2244_v30 }
 0x168   : > { %v2282_v39 = vunpack.c.l.b16 %v2245_v34 }
 0x16a   : > { %v2288_v60 = vpack.c.b16 %v2282_v39, %v2281_v43 }
 0x16c   : > { %1811 = vmatmul.bf16.gmra.mxu2 %v1735_v63 }
 0x16f   : > { %1632 = vmatmul.bf16.gmra.mxu1 %v1560_v26 }
 0x173   : > { %1946 = vmatmul.bf16.gmra.mxu3 %v2952_v13  ;;  %v2257_v13 = vsel %vm3771_vm8, %v3023_v8, %v2256_v9  ;;  %v3190_v8 = vld [vmem:[#allocation11 + $0x18] sm:$0xff] }
 0x174   : > { %v2285_v37 = vunpack.c.l.b16 %v2257_v13 }
 0x175   : > { %2192 = vmatmul.bf16.gmra.mxu0 %v2116_v21 }
 0x17e   : > { %v1074_v38 = vpop.f32.mrf.mxu2 }
 0x17f   : > { %1637 = vmatmul.bf16.gmra.mxu1 %v1561_v35 }
 0x180   : > { %v1377_v28 = vpop.f32.mrf.mxu0 }
 0x185   : > { %2351 = vmatmul.bf16.vlgmr.msrb.gmra.mxu0 %v3972_v3  ;;  %v2211_v3 = vld [vmem:[#allocation2 + $0x38] sm:$0xe] }
 0x186   : > { %v1076_v33 = vpop.f32.mrf.mxu2  ;;  %v1243_v36 = vpop.f32.mrf.mxu3  ;;  %v3022_v53 = vrot.slane %v2211_v3, 9  ;;  %v3193_v3 = vld [vmem:[#allocation11 + $0x30] sm:$0xff] }
 0x188   : > { %v1379_v42 = vpop.f32.mrf.mxu0  ;;  %v2253_v59 = vsel %vm3771_vm8, %v3022_v53, %v2252_v44 }
 0x189   : > { %v2284_v17 = vunpack.c.l.b16 %v2253_v59 }
 0x18b   : > { %v2289_v41 = vpack.c.b16 %v2284_v17, %v2283_v62 }
 0x18c   : > { %v973_v45 = vpop.f32.mrf.mxu1 }
 0x18d   : > { %v1075_v46 = vadd.f32 %v1074_v38, %v973_v45  ;;  %v2290_v38 = vpack.c.b16 %v2286_v55, %v2285_v37 }
 0x18e   : > { %v1245_v61 = vpop.f32.mrf.mxu3 }
 0x18f   : > { %v1263_v40 = vadd.f32 %v1243_v36, %v1075_v46  ;;  %2356 = vmatmul.bf16.vlgmr.msra.gmra.mxu1 %v2288_v60  ;;  %v1079_v47 = vpop.f32.mrf.mxu2  ;;  %v3194_v46 = vld [vmem:[#allocation11 + $0x38] sm:$0xff] }
 0x190   : > { %2468 = vmatpush.bf16.msra.mxu2 %v3194_v46  ;;  %3212 = vmatpush.bf16.msrb.mxu3 %v3194_v46 }
 0x191   : > { %v1397_v20 = vadd.f32 %v1377_v28, %v1263_v40 }
 0x192   : > { %v1382_v50 = vpop.f32.mrf.mxu0 }
 0x194   : > { %v975_v56 = vpop.f32.mrf.mxu1  ;;  %2469 = vmatpush.bf16.msra.mxu2 %v3193_v3  ;;  %3213 = vmatpush.bf16.msrb.mxu3 %v3193_v3  ;;  %v3317_v3 = vld [vmem:[%s4102_s6] ss:$0 sm:$0xff] }
 0x195   : > { %v1077_v21 = vadd.f32 %v1076_v33, %v975_v56  ;;  %v3192_v56 = vld [vmem:[#allocation11 + $0x28] sm:$0xff] }
 0x196   : > { %v1248_v58 = vpop.f32.mrf.mxu3 }
 0x197   : > { %v1081_v63 = vpop.f32.mrf.mxu2  ;;  %v1264_v35 = vadd.f32 %v1245_v61, %v1077_v21 }
 0x198   : > { %2470 = vmatpush.bf16.msra.mxu2 %v3192_v56  ;;  %3214 = vmatpush.bf16.msrb.mxu3 %v3192_v56 }
 0x199   : > { %v4021_v29 = vadd.f32 %v1379_v42, %v1264_v35 }
 0x19a   : > { %v1384_v1 = vpop.f32.mrf.mxu0 }
 0x19c   : > { %v978_v18 = vpop.f32.mrf.mxu1 }
 0x19d   : > { %v1080_v2 = vadd.f32 %v1079_v47, %v978_v18 }
 0x19e   : > { %v1250_v0 = vpop.f32.mrf.mxu3 }
 0x19f   : > { %v1265_v26 = vadd.f32 %v1248_v58, %v1080_v2  ;;  %2361 = vmatmul.bf16.gmra.mxu1 %v2289_v41  ;;  %v1084_v4 = vpop.f32.mrf.mxu2 }
 0x1a1   : > { %v1399_v54 = vadd.f32 %v1382_v50, %v1265_v26 }
 0x1a2   : > { %v1387_v7 = vpop.f32.mrf.mxu0 }
 0x1a4   : > { %v980_v12 = vpop.f32.mrf.mxu1 }
 0x1a5   : > { %v1082_v32 = vadd.f32 %v1081_v63, %v980_v12 }
 0x1a6   : > { %v1253_v15 = vpop.f32.mrf.mxu3 }
 0x1a7   : > { %v1086_v16 = vpop.f32.mrf.mxu2  ;;  %v1266_v36 = vadd.f32 %v1250_v0, %v1082_v32 }
 0x1a9   : > { %v4023_v60 = vadd.f32 %v1384_v1, %v1266_v36  ;;  %v3191_v1 = vld [vmem:[#allocation11 + $0x20] sm:$0xff] }
 0x1aa   : > { %v1389_v22 = vpop.f32.mrf.mxu0  ;;  %2471 = vmatpush.bf16.msra.mxu2 %v3191_v1  ;;  %3215 = vmatpush.bf16.msrb.mxu3 %v3191_v1 }
 0x1ac   : > { %v983_v23 = vpop.f32.mrf.mxu1 }
 0x1ad   : > { %v1085_v19 = vadd.f32 %v1084_v4, %v983_v23 }
 0x1ae   : > { %v1255_v27 = vpop.f32.mrf.mxu3  ;;  %2472 = vmatpush.bf16.msra.mxu2 %v3190_v8  ;;  %3216 = vmatpush.bf16.msrb.mxu3 %v3190_v8 }
 0x1af   : > { %v1267_v24 = vadd.f32 %v1253_v15, %v1085_v19  ;;  %2366 = vmatmul.bf16.gmra.mxu1 %v2290_v38  ;;  %v1089_v25 = vpop.f32.mrf.mxu2  ;;  %v3188_v38 = vld [vmem:[#allocation11 + $0x8] sm:$0xff] }
 0x1b1   : > { %v1401_v51 = vadd.f32 %v1387_v7, %v1267_v24 }
 0x1b2   : > { %v1392_v30 = vpop.f32.mrf.mxu0 }
 0x1b4   : > { %v985_v49 = vpop.f32.mrf.mxu1 }
 0x1b5   : > { %v1087_v48 = vadd.f32 %v1086_v16, %v985_v49  ;;  %v3189_v16 = vld [vmem:[#allocation11 + $0x10] sm:$0xff]  ;;  %v3187_v49 = vld [vmem:[#allocation11] sm:$0xff] }
 0x1b6   : > { %v1258_v31 = vpop.f32.mrf.mxu3  ;;  %2473 = vmatpush.bf16.msra.mxu2 %v3189_v16  ;;  %3217 = vmatpush.bf16.msrb.mxu3 %v3189_v16 }
 0x1b7   : > { %v1091_v28 = vpop.f32.mrf.mxu2  ;;  %v1268_v53 = vadd.f32 %v1255_v27, %v1087_v48 }
 0x1b9   : > { %v4027_v57 = vadd.f32 %v1389_v22, %v1268_v53 }
 0x1ba   : > { %v1394_v33 = vpop.f32.mrf.mxu0  ;;  %2474 = vmatpush.bf16.msra.mxu2 %v3188_v38  ;;  %3218 = vmatpush.bf16.msrb.mxu3 %v3188_v38 }
 0x1bc   : > { %v988_v34 = vpop.f32.mrf.mxu1 }
 0x1bd   : > { %v1090_v43 = vadd.f32 %v1089_v25, %v988_v34 }
 0x1be   : > { %v1260_v45 = vpop.f32.mrf.mxu3  ;;  %2475 = vmatpush.bf16.msra.mxu2 %v3187_v49  ;;  %3219 = vmatpush.bf16.msrb.mxu3 %v3187_v49 }
 0x1bf   : > { %v1269_v39 = vadd.f32 %v1258_v31, %v1090_v43  ;;  %v1797_v61 = vpop.f32.mrf.mxu2 }
 0x1c1   : > { %v1403_v18 = vadd.f32 %v1392_v30, %v1269_v39 }
 0x1c2   : > { %v2178_v40 = vpop.f32.mrf.mxu0 }
 0x1c4   : > { %v990_v42 = vpop.f32.mrf.mxu1 }
 0x1c5   : > { %v1092_v17 = vadd.f32 %v1091_v28, %v990_v42 }
 0x1c6   : > { %v1932_v47 = vpop.f32.mrf.mxu3 }
 0x1c7   : > { %v1799_v44 = vpop.f32.mrf.mxu2  ;;  %v1270_v0 = vadd.f32 %v1260_v45, %v1092_v17 }
 0x1c9   : > { %v4031_v9 = vadd.f32 %v1394_v33, %v1270_v0 }
 0x1ca   : > { %v4025_v50 = vpop.f32.mrf.mxu0 }
 0x1cc   : > { %v1623_v52 = vpop.f32.mrf.mxu1 }
 0x1cd   : > { %v1643_v4 = vadd.f32 %v1623_v52, %v1397_v20 }
 0x1ce   : > { %v1934_v59 = vpop.f32.mrf.mxu3 }
 0x1cf   : > { %v1802_v62 = vpop.f32.mrf.mxu2  ;;  %v1817_v6 = vadd.f32 %v1797_v61, %v1643_v4 }
 0x1d1   : > { %v1952_v13 = vadd.f32 %v1932_v47, %v1817_v6 }
 0x1d2   : > { %v2183_v58 = vpop.f32.mrf.mxu0 }
 0x1d3   : > { %v2198_v21 = vadd.f32 %v2178_v40, %v1952_v13 }
 0x1d4   : > { %v1625_v63 = vpop.f32.mrf.mxu1 }
 0x1d5   : > { %v1644_v33 = vadd.f32 %v1625_v63, %v4021_v29 }
 0x1d6   : > { %v1937_v26 = vpop.f32.mrf.mxu3 }
 0x1d7   : > { %v1804_v10 = vpop.f32.mrf.mxu2  ;;  %v1818_v43 = vadd.f32 %v1799_v44, %v1644_v33 }
 0x1d9   : > { %v1953_v42 = vadd.f32 %v1934_v59, %v1818_v43 }
 0x1da   : > { %v4029_v2 = vpop.f32.mrf.mxu0 }
 0x1dc   : > { %v1628_v41 = vpop.f32.mrf.mxu1 }
 0x1dd   : > { %v1645_v5 = vadd.f32 %v1628_v41, %v1399_v54 }
 0x1de   : > { %v1939_v15 = vpop.f32.mrf.mxu3 }
 0x1df   : > { %v1819_v7 = vadd.f32 %v1802_v62, %v1645_v5  ;;  %v1807_v20 = vpop.f32.mrf.mxu2 }
 0x1e1   : > { %v1954_v14 = vadd.f32 %v1937_v26, %v1819_v7 }
 0x1e2   : > { %v2188_v11 = vpop.f32.mrf.mxu0 }
 0x1e3   : > { %v2200_v37 = vadd.f32 %v2183_v58, %v1954_v14 }
 0x1e4   : > { %v1630_v12 = vpop.f32.mrf.mxu1 }
 0x1e5   : > { %v1646_v47 = vadd.f32 %v1630_v12, %v4023_v60 }
 0x1e6   : > { %v1942_v35 = vpop.f32.mrf.mxu3 }
 0x1e7   : > { %v1809_v30 = vpop.f32.mrf.mxu2  ;;  %v1820_v53 = vadd.f32 %v1804_v10, %v1646_v47  ;;  %v2501_v47 = vld [vmem:[%s3720_s19 + $0x20] sm:$0xff] }
 0x1e9   : > { %v1955_v62 = vadd.f32 %v1939_v15, %v1820_v53 }
 0x1ea   : > { %v2190_v55 = vpop.f32.mrf.mxu0 }
 0x1eb   : > { %v2201_v60 = vadd.f32 %v4029_v2, %v1955_v62 }
 0x1ec   : > { %v1633_v22 = vpop.f32.mrf.mxu1 }
 0x1ed   : > { %v1647_v23 = vadd.f32 %v1633_v22, %v1401_v51  ;;  %v2199_v51 = vadd.f32 %v4025_v50, %v1953_v42 }
 0x1ee   : > { %v1944_v32 = vpop.f32.mrf.mxu3 }
 0x1ef   : > { %v1821_v19 = vadd.f32 %v1807_v20, %v1647_v23  ;;  %v1812_v36 = vpop.f32.mrf.mxu2 }
 0x1f1   : > { %v1956_v25 = vadd.f32 %v1942_v35, %v1821_v19 }
 0x1f2   : > { %v2193_v24 = vpop.f32.mrf.mxu0 }
 0x1f3   : > { %v2202_v31 = vadd.f32 %v2188_v11, %v1956_v25 }
 0x1f4   : > { %v1635_v27 = vpop.f32.mrf.mxu1 }
 0x1f5   : > { %v1648_v50 = vadd.f32 %v1635_v27, %v4027_v57 }
 0x1f6   : > { %v1947_v46 = vpop.f32.mrf.mxu3 }
 0x1f7   : > { %v1822_v7 = vadd.f32 %v1809_v30, %v1648_v50  ;;  %v1814_v22 = vpop.f32.mrf.mxu2 }
 0x1f9   : > { %v1957_v11 = vadd.f32 %v1944_v32, %v1822_v7 }
 0x1fa   : > { %v2195_v54 = vpop.f32.mrf.mxu0 }
 0x1fb   : > { %v2203_v13 = vadd.f32 %v2190_v55, %v1957_v11 }
 0x1fc   : > { %v1638_v28 = vpop.f32.mrf.mxu1 }
 0x1fd   : > { %v1649_v34 = vadd.f32 %v1638_v28, %v1403_v18  ;;  %v2497_v28 = vld [vmem:[%s3720_s19] sm:$0xff] }
 0x1fe   : > { %v1949_v19 = vpop.f32.mrf.mxu3 }
 0x1ff   : > { %v1823_v39 = vadd.f32 %v1812_v36, %v1649_v34 }
 0x201   : > { %v1958_v61 = vadd.f32 %v1947_v46, %v1823_v39  ;;  %v2499_v39 = vld [vmem:[%s3720_s19 + $0x10] sm:$0xff] }
 0x202   : > { %v2352_v45 = vpop.f32.mrf.mxu0 }
 0x203   : > { %v2372_v48 = vadd.f32 %v2352_v45, %v2198_v21  ;;  %v2204_v52 = vadd.f32 %v2193_v24, %v1958_v61 }
 0x204   : > { %v1640_v40 = vpop.f32.mrf.mxu1 }
 0x205   : > { %v2384_v56 = vadd.f32 %v3317_v3, %v2372_v48  ;;  %v1650_v2 = vadd.f32 %v1640_v40, %v4031_v9  ;;  %v2500_v40 = vld [vmem:[%s3720_s19 + $0x18] sm:$0xff] }
 0x207   : > { %v2392_v17 = vmax.f32 %v2384_v56, 0.0  ;;  %v1824_v57 = vadd.f32 %v1814_v22, %v1650_v2 }
 0x209   : > { %v1959_v38 = vadd.f32 %v1949_v19, %v1824_v57 }
 0x20a   : > { %v2354_v29 = vpop.f32.mrf.mxu0 }
 0x20b   : > { %v2373_v44 = vadd.f32 %v2354_v29, %v2199_v51  ;;  %v2205_v55 = vadd.f32 %v2195_v54, %v1959_v38  ;;  %v2498_v54 = vld [vmem:[%s3720_s19 + $0x8] sm:$0xff] }
 0x20c   : > { %v2357_v58 = vpop.f32.mrf.mxu1  ;;  %v2502_v51 = vld [vmem:[%s3720_s19 + $0x28] sm:$0xff] }
 0x20d   : > { %v2385_v63 = vadd.f32 %v3317_v3, %v2373_v44  ;;  %v2374_v1 = vadd.f32 %v2357_v58, %v2200_v37  ;;  %v2504_v58 = vld [vmem:[%s3720_s19 + $0x38] sm:$0xff] }
 0x20f   : > { %v2393_v59 = vmax.f32 %v2385_v63, 0.0  ;;  %v2386_v26 = vadd.f32 %v3317_v3, %v2374_v1 }
 0x211   : > { %v2400_v18 = vpack.c.bf16 %v2393_v59, %v2392_v17  ;;  %v2394_v5 = vmax.f32 %v2386_v26, 0.0 }
 0x213   : > { %2476 = vmatmul.bf16.vlgmr.msra.gmra.mxu2 %v2400_v18 }
 0x214   : > { %v2359_v41 = vpop.f32.mrf.mxu1 }
 0x215   : > { %v2375_v0 = vadd.f32 %v2359_v41, %v2201_v60 }
 0x217   : > { %v2387_v4 = vadd.f32 %v3317_v3, %v2375_v0 }
 0x219   : > { %v2395_v6 = vmax.f32 %v2387_v4, 0.0 }
 0x21b   : > { %v2401_v8 = vpack.c.bf16 %v2395_v6, %v2394_v5 }
 0x21c   : > { %v2362_v10 = vpop.f32.mrf.mxu1 }
 0x21d   : > { %v2376_v12 = vadd.f32 %v2362_v10, %v2202_v31 }
 0x21f   : > { %v2388_v15 = vadd.f32 %v3317_v3, %v2376_v12 }
 0x221   : > { %v2396_v37 = vmax.f32 %v2388_v15, 0.0 }
 0x223   : > { %2481 = vmatmul.bf16.gmra.mxu2 %v2401_v8 }
 0x224   : > { %v2364_v14 = vpop.f32.mrf.mxu1 }
 0x225   : > { %v2377_v16 = vadd.f32 %v2364_v14, %v2203_v13 }
 0x227   : > { %v2389_v21 = vadd.f32 %v3317_v3, %v2377_v16 }
 0x229   : > { %v2397_v20 = vmax.f32 %v2389_v21, 0.0 }
 0x22b   : > { %v2402_v23 = vpack.c.bf16 %v2397_v20, %v2396_v37 }
 0x22c   : > { %v2367_v35 = vpop.f32.mrf.mxu1 }
 0x22d   : > { %v2378_v24 = vadd.f32 %v2367_v35, %v2204_v52  ;;  %v2503_v52 = vld [vmem:[%s3720_s19 + $0x30] sm:$0xff] }
 0x22f   : > { %v2390_v25 = vadd.f32 %v3317_v3, %v2378_v24 }
 0x231   : > { %v2398_v49 = vmax.f32 %v2390_v25, 0.0 }
 0x233   : > { %2486 = vmatmul.bf16.gmra.mxu2 %v2402_v23 }
 0x234   : > { %v2369_v27 = vpop.f32.mrf.mxu1 }
 0x235   : > { %v2379_v30 = vadd.f32 %v2369_v27, %v2205_v55 }
 0x237   : > { %v2391_v9 = vadd.f32 %v3317_v3, %v2379_v30 }
 0x239   : > { %v2399_v31 = vmax.f32 %v2391_v9, 0.0 }
 0x23b   : > { %v2403_v32 = vpack.c.bf16 %v2399_v31, %v2398_v49 }
 0x23d   : > { %2491 = vmatmul.bf16.vlgmr.msrb.gmra.mxu3 %v2403_v32 }
 0x296   : > { %v2477_v33 = vpop.f32.mrf.mxu2 }
 0x297   : > { %v2505_v34 = vadd.f32 %v2497_v28, %v2477_v33 }
 0x299   : > { %2513 = vst [vmem:[%s4045_s14] sm:$0xff] %v2505_v34 }
 0x29e   : > { %v2479_v36 = vpop.f32.mrf.mxu2 }
 0x29f   : > { %v2506_v43 = vadd.f32 %v2498_v54, %v2479_v36 }
 0x2a1   : > { %2514 = vst [vmem:[%s4045_s14 + $0x8] sm:$0xff] %v2506_v43 }
 0x2a6   : > { %v2482_v45 = vpop.f32.mrf.mxu2 }
 0x2a7   : > { %v2507_v46 = vadd.f32 %v2499_v39, %v2482_v45 }
 0x2a9   : > { %2515 = vst [vmem:[%s4045_s14 + $0x10] sm:$0xff] %v2507_v46 }
 0x2ae   : > { %v2484_v42 = vpop.f32.mrf.mxu2 }
 0x2af   : > { %v2508_v61 = vadd.f32 %v2500_v40, %v2484_v42 }
 0x2b1   : > { %2516 = vst [vmem:[%s4045_s14 + $0x18] sm:$0xff] %v2508_v61 }
 0x2b6   : > { %v2487_v48 = vpop.f32.mrf.mxu2 }
 0x2b7   : > { %v2509_v3 = vadd.f32 %v2501_v47, %v2487_v48 }
 0x2b9   : > { %2517 = vst [vmem:[%s4045_s14 + $0x20] sm:$0xff] %v2509_v3 }
 0x2be   : > { %v2489_v29 = vpop.f32.mrf.mxu2 }
 0x2bf   : > { %v2510_v53 = vadd.f32 %v2502_v51, %v2489_v29 }
 0x2c0   : > { %v2492_v56 = vpop.f32.mrf.mxu3 }
 0x2c1   : > { %v2511_v44 = vadd.f32 %v2503_v52, %v2492_v56  ;;  %2518 = vst [vmem:[%s4045_s14 + $0x28] sm:$0xff] %v2510_v53 }
 0x2c3   : > { %2519 = vst [vmem:[%s4045_s14 + $0x30] sm:$0xff] %v2511_v44 }
 0x2c8   : > { %v2494_v63 = vpop.f32.mrf.mxu3 }
 0x2c9   : > { %v2512_v62 = vadd.f32 %v2504_v58, %v2494_v63 }
 0x2cb   : > { %2520 = vst [vmem:[%s4045_s14 + $0x38] sm:$0xff] %v2512_v62 }
 0x2cc   : > { %3495 = shalt.err (!%p3492_p11)
}
 0x2cd   : > { %s3553_s13 = smov 128   ;;  %s3554_s14 = smov 8  }
 0x2ce   : > { %3238 = dma.vmem_to_hbm [thread:$0]  (%p3684_p3), %s2535_s1, 1024, %s2537_s3, %s2522_s11, %s3553_s13, %s3553_s13, %s3554_s14  }
 0x2cf PF: > { %s2551_s18 = sand.u32 1, %s3530_s27   ;;  %p4123_p12 = scmp.ge.s32.totalorder %s3542_s30, 2 }
 0x2d0   : > { %s2552_s20 = scalar_lea.sflag [#allocation5], %s2551_s18 }
 0x2d1   : > { %p3258_p13 = pnand %p4123_p12, %p3635_p6 }
 0x2d3   : > { %p3259_p0 = pneg %p3258_p13 }
 0x2d5   : > { %3525 = dma.done.wait (%p3259_p0), %s2552_s20, 1024  }
 0x2d6   : > { %3527 = vsyncadd (%p3259_p0), %s2552_s20, 4294966272  ;;  %p23_p5 = scmp.ge.s32.totalorder %s3674_s22, 4   ;;  %s4124_s27 = smov %s3534_s28 }
 0x2d7   : > { %s4125_s28 = smov %s3538_s29  ;;  %s4126_s29 = smov %s3690_s10 }
 0x2d8   : > { %s4127_s30 = smov %s3674_s22  ;;  %25 = sbr.rel (!%p23_p5) target bundleno = 10 (0xa), region = 124 }
 0x2dd   :  { %2558 = vsyncpa [#allocation4], 1 }
 0x2de   :  { %2560 = vsyncpa [#allocation4 + $0x1], 1 }
 0x2df   :  { %2561 = vsyncpa [#allocation7], 1 }
 0x2e0   :  { %2562 = vsyncpa [#allocation10], 1 }
 0x2e1   :  { %2563 = vsyncpa [#allocation5], 1 }
 0x2e2   :  { %2565 = vsyncpa [#allocation5 + $0x1], 1 }

</bundles_post_ra>
